<compile_context>
chip_gen: v5e
topology: v5e:2x2
jax: 0.10.0
libtpu: 0.0.40
codegen_flags: <defaults>
</compile_context>

<pallas_src>
import jax
import jax.numpy as jnp
from jax.experimental import pallas as pl
from jax.experimental.pallas import tpu as pltpu


def _silu(x):
    # Exact sigmoid: the approximate EUP reciprocal compounded to >5e-3 error.
    return x / (1.0 + jnp.exp(-x))


def _make_nacs_kernel(n_blocks, compute_dtype):
    f32 = jnp.float32
    cdt = compute_dtype

    def kernel(l0t_ref, l1t_ref, rt_ref, *refs):
        out_ref = refs[-1]
        w = refs[:-1]

        # Feature-major activations: features on sublanes, atoms on lanes.
        s = l0t_ref[...]                         # (F, TN)    compute dtype
        v = [l1t_ref[d] for d in range(3)]       # 3 x (F, TN)

        s_out = None
        for b in range(n_blocks):
            wvV, wvW, w1s, w1n, b1, w2s, w2g, b2s, b2g = w[9 * b:9 * b + 9]

            # mix_vectors (bias-free Dense), one matmul per spatial dim:
            #   V_d = wvV^T @ v_d, W_d = wvW^T @ v_d          -> (n_o, TN)
            V = [jnp.dot(wvV[...], v[d], preferred_element_type=f32)
                 for d in range(3)]
            W = [jnp.dot(wvW[...], v[d], preferred_element_type=f32)
                 for d in range(3)]
            # torch.norm(V, dim=-2): L2 over the spatial axis (lane-dense VPU).
            vn = jnp.sqrt(V[0] * V[0] + V[1] * V[1] + V[2] * V[2])

            # scalar_net layer 1 on concat([s, ||V||]) as split matmuls; SiLU.
            h = (jnp.dot(w1s[...], s, preferred_element_type=f32)
                 + jnp.dot(w1n[...], vn.astype(cdt), preferred_element_type=f32)
                 + b1[...])
            h = _silu(h).astype(cdt)             # (hid, TN)

            # scalar_net layer 2: scalar output and vector gate.
            s_out = jnp.dot(w2s[...], h, preferred_element_type=f32) + b2s[...]
            gate = jnp.dot(w2g[...], h, preferred_element_type=f32) + b2g[...]
            v_new = [gate * W[d] for d in range(3)]          # (n_o, TN) f32

            if b < n_blocks - 1:
                # sactivation = SiLU on every block but the last.
                s = _silu(s_out).astype(cdt)
                v = [x.astype(cdt) for x in v_new]
            else:
                v = v_new

        # nacs[d] = R[d] * nacss + nacsv[d], emitted lane-dense as (3, n_out, TN).
        r = rt_ref[...]                          # (3, TN) f32
        for d in range(3):
            out_ref[d] = r[d:d + 1, :] * s_out + v[d]

    return kernel


def _round_up(x, m):
    return ((x + m - 1) // m) * m


def nacs_forward(l0, l1, R, params, n_out, *, tile_n=2048,
                 compute_dtype=jnp.bfloat16):
    """l0: (N, F), l1: (N, 3, F), R: (N, 3)  ->  nacs (N, n_out, 3).

    compute_dtype is the MXU input dtype (f32 accumulation everywhere);
    bfloat16 is the native MXU dtype on v5e/v6e/v7x.  tile_n bounds the
    per-grid-step atom tile (lane axis).
    """
    N, F = l0.shape
    n_blocks = len(params)
    cdt = jnp.dtype(compute_dtype)

    # --- atom tile (lane axis) ---------------------------------------------
    tn = _round_up(min(int(tile_n), N), 128)
    if N > 128 and pl.cdiv(N, tn) < 2:
        # Keep >= 2 grid steps so the "parallel" atom axis can be sharded
        # across both v7x TensorCores; costs one ~0.35us step on 1-TC chips.
        tn = _round_up(pl.cdiv(N, 2), 128)
    grid = (pl.cdiv(N, tn),)

    # --- feature-major inputs ------------------------------------------------
    # TODO(synk): produce the representation feature-major upstream (or move
    # these transposes onto the in-kernel XLU) to drop this extra HBM pass.
    l0t = l0.T.astype(cdt)                               # (F, N)
    l1t = jnp.transpose(l1, (1, 2, 0)).astype(cdt)       # (3, F, N)
    rt = R.T.astype(jnp.float32)                         # (3, N)

    # --- weights: transposed for W^T @ x, pre-cast to compute_dtype ----------
    packed = []
    for (wvV, wvW, w1s, w1n, b1, w2s, w2g, b2s, b2g) in params:
        packed += [
            wvV.T.astype(cdt), wvW.T.astype(cdt),        # mix_vectors
            w1s.T.astype(cdt), w1n.T.astype(cdt),        # scalar_net layer 1
            b1.T.astype(jnp.float32),                    # biases stay f32
            w2s.T.astype(cdt), w2g.T.astype(cdt),        # scalar_net layer 2
            b2s.T.astype(jnp.float32), b2g.T.astype(jnp.float32),
        ]
    # Constant index maps -> weights fetched once, stay VMEM-resident.
    weight_specs = [pl.BlockSpec(p.shape, lambda i: (0, 0)) for p in packed]

    # --- cost estimate & VMEM sizing -----------------------------------------
    flops = 0
    transcendentals = 0
    for i, (wvV, wvW, w1s, w1n, b1, w2s, w2g, b2s, b2g) in enumerate(params):
        s_in, n_o = wvV.shape
        hid = w1s.shape[1]
        flops += N * (2 * 3 * s_in * n_o * 2             # mix_vectors (V and W)
                      + 2 * (s_in + n_o) * hid           # scalar_net layer 1
                      + 2 * hid * n_o * 2)               # scalar_net layer 2
        transcendentals += N * hid + (N * n_o if i < n_blocks - 1 else 0)
    bytes_accessed = (l0t.size * cdt.itemsize + l1t.size * cdt.itemsize
                      + rt.size * 4 + 3 * n_out * N * 4
                      + sum(p.size * p.dtype.itemsize for p in packed))
    cost = pl.CostEstimate(flops=flops, transcendentals=transcendentals,
                           bytes_accessed=bytes_accessed)

    # Per-step double-buffered block bytes (sublane padding to 8 included).
    blk_bytes = (F * tn * cdt.itemsize                   # l0 tile
                 + 3 * F * tn * cdt.itemsize             # l1 tile
                 + 8 * tn * 4                            # R tile (3 -> 8 rows)
                 + 3 * 8 * tn * 4)                       # out tile (n_out -> 8)
    vmem_est = 4 * blk_bytes                             # 2x buffers + scratch slack
    vmem_limit = None
    if vmem_est > 12 * 2 ** 20:
        # Raise scoped VMEM (v5e default is 16 MiB); cap for v7x's 64 MiB.
        vmem_limit = int(min(vmem_est + (4 << 20), 60 * 2 ** 20))

    out = pl.pallas_call(
        _make_nacs_kernel(n_blocks, cdt),
        out_shape=jax.ShapeDtypeStruct((3, n_out, N), jnp.float32),
        grid=grid,
        in_specs=[
            pl.BlockSpec((F, tn), lambda i: (0, i)),         # scalar rep tile
            pl.BlockSpec((3, F, tn), lambda i: (0, 0, i)),   # vector rep tile
            pl.BlockSpec((3, tn), lambda i: (0, i)),         # positions tile
        ] + weight_specs,
        out_specs=pl.BlockSpec((3, n_out, tn), lambda i: (0, 0, i)),
        compiler_params=pltpu.CompilerParams(
            dimension_semantics=("parallel",),
            vmem_limit_bytes=vmem_limit),
        cost_estimate=cost,
    )(l0t, l1t, rt, *packed)

    # (3, n_out, N) -> (N, n_out, 3) mirrors torch.transpose(nacs_painn, 2, 1).
    return jnp.transpose(out, (2, 1, 0))


def _dense_init(key, shape, scale=0.2):
    return jax.random.normal(key, shape, jnp.float32) * scale


def make_params(key, n_in, n_out, n_layers=2):
    """Shapes follow schnetpack.nn.build_gated_equivariant_mlp with n_hidden=None
    (pyramidal widths), deterministic synthetic values."""
    c = n_in
    n_neurons = []
    for _ in range(n_layers):
        n_neurons.append(c)
        c = max(n_out, c // 2)
    n_neurons.append(n_out)
    gating_hidden = n_neurons[:-1]

    blocks = []
    for i in range(n_layers):
        s_in = n_neurons[i]
        out = n_neurons[i + 1]
        hid = gating_hidden[i]
        key, *ks = jax.random.split(key, 10)
        blocks.append((
            _dense_init(ks[0], (s_in, out)),   # wvV  (mix_vectors, V half)
            _dense_init(ks[1], (s_in, out)),   # wvW  (mix_vectors, W half)
            _dense_init(ks[2], (s_in, hid)),   # w1s  (layer-1, scalar slice)
            _dense_init(ks[3], (out, hid)),    # w1n  (layer-1, ||V|| slice)
            _dense_init(ks[4], (1, hid)),      # b1
            _dense_init(ks[5], (hid, out)),    # w2s  (layer-2, scalar out)
            _dense_init(ks[6], (hid, out)),    # w2g  (layer-2, vector gate)
            _dense_init(ks[7], (1, out)),      # b2s
            _dense_init(ks[8], (1, out)),      # b2g
        ))
    return blocks


def reference_forward(l0, l1, R, params):
    """Pure-JAX reference mirroring the PyTorch/schnetpack semantics."""
    hp = jax.lax.Precision.HIGHEST
    s, v = l0, l1                                    # v: (N, 3, F)
    nlast = len(params) - 1
    for i, (wvV, wvW, w1s, w1n, b1, w2s, w2g, b2s, b2g) in enumerate(params):
        V = jnp.einsum('ndf,fo->ndo', v, wvV, precision=hp)
        W = jnp.einsum('ndf,fo->ndo', v, wvW, precision=hp)
        Vn = jnp.sqrt(jnp.sum(V * V, axis=-2))
        h = jax.nn.silu(jnp.dot(s, w1s, precision=hp)
                        + jnp.dot(Vn, w1n, precision=hp) + b1)
        s_out = jnp.dot(h, w2s, precision=hp) + b2s
        gate = jnp.dot(h, w2g, precision=hp) + b2g
        v = gate[:, None, :] * W
        s = jax.nn.silu(s_out) if i < nlast else s_out
    nacs = jnp.einsum('ij,ik->ijk', R, s) + v        # (N, 3, n_out)
    return jnp.transpose(nacs, (0, 2, 1))            # (N, n_out, 3)


if __name__ == "__main__":
    key = jax.random.PRNGKey(0)
    N_ATOMS, N_IN, N_OUT = 256, 32, 4     # small shapes; grid of 2 tiles of 128

    k_l0, k_l1, k_r, k_p = jax.random.split(key, 4)
    l0 = jax.random.normal(k_l0, (N_ATOMS, N_IN), jnp.float32)           # scalar rep
    l1 = jax.random.normal(k_l1, (N_ATOMS, 3, N_IN), jnp.float32) * 0.1  # vector rep
    R = jax.random.normal(k_r, (N_ATOMS, 3), jnp.float32)                # positions

    params = make_params(k_p, N_IN, N_OUT, n_layers=2)
    ref = reference_forward(l0, l1, R, params)

    # f32 MXU inputs: exact activations -> tight tolerance.
    out_f32 = jax.block_until_ready(
        nacs_forward(l0, l1, R, params, N_OUT, compute_dtype=jnp.float32))
    assert out_f32.shape == (N_ATOMS, N_OUT, 3), out_f32.shape
    err_f32 = float(jnp.max(jnp.abs(out_f32 - ref)))
    assert err_f32 < 1e-3, f"f32 mismatch vs reference: {err_f32}"

    # Default bf16-in / f32-accumulate path (native MXU dtype); loose check.
    out_bf16 = jax.block_until_ready(nacs_forward(l0, l1, R, params, N_OUT))
    err_bf16 = float(jnp.max(jnp.abs(out_bf16 - ref)))
    assert err_bf16 < 2.5e-1, f"bf16 mismatch vs reference: {err_bf16}"

    print("KERNEL_OK")
</pallas_src>

<mosaic_0001>
module attributes {stable_mosaic.version = 11 : i64} {
  func.func @kernel(%arg0: i32, %arg1: memref<32x128xf32, #tpu.memory_space<vmem>>, %arg2: memref<3x32x128xf32, #tpu.memory_space<vmem>>, %arg3: memref<3x128xf32, #tpu.memory_space<vmem>>, %arg4: memref<16x32xf32, #tpu.memory_space<vmem>>, %arg5: memref<16x32xf32, #tpu.memory_space<vmem>>, %arg6: memref<32x32xf32, #tpu.memory_space<vmem>>, %arg7: memref<32x16xf32, #tpu.memory_space<vmem>>, %arg8: memref<32x1xf32, #tpu.memory_space<vmem>>, %arg9: memref<16x32xf32, #tpu.memory_space<vmem>>, %arg10: memref<16x32xf32, #tpu.memory_space<vmem>>, %arg11: memref<16x1xf32, #tpu.memory_space<vmem>>, %arg12: memref<16x1xf32, #tpu.memory_space<vmem>>, %arg13: memref<4x16xf32, #tpu.memory_space<vmem>>, %arg14: memref<4x16xf32, #tpu.memory_space<vmem>>, %arg15: memref<16x16xf32, #tpu.memory_space<vmem>>, %arg16: memref<16x4xf32, #tpu.memory_space<vmem>>, %arg17: memref<16x1xf32, #tpu.memory_space<vmem>>, %arg18: memref<4x16xf32, #tpu.memory_space<vmem>>, %arg19: memref<4x16xf32, #tpu.memory_space<vmem>>, %arg20: memref<4x1xf32, #tpu.memory_space<vmem>>, %arg21: memref<4x1xf32, #tpu.memory_space<vmem>>, %arg22: memref<3x4x128xf32, #tpu.memory_space<vmem>>) attributes {dimension_semantics = [#tpu.dimension_semantics<parallel>], iteration_bounds = array<i64: 2>, scalar_prefetch = 0 : i64, scratch_operands = 0 : i64, tpu.core_type = #tpu.core_type<tc>, window_params = [{transform_indices = @transform_0, window_bounds = array<i64: 32, 128>}, {transform_indices = @transform_1, window_bounds = array<i64: 3, 32, 128>}, {transform_indices = @transform_2, window_bounds = array<i64: 3, 128>}, {pipeline_mode = #tpu.pipeline_mode<synchronous>, transform_indices = @transform_3, window_bounds = array<i64: 16, 32>}, {pipeline_mode = #tpu.pipeline_mode<synchronous>, transform_indices = @transform_4, window_bounds = array<i64: 16, 32>}, {pipeline_mode = #tpu.pipeline_mode<synchronous>, transform_indices = @transform_5, window_bounds = array<i64: 32, 32>}, {pipeline_mode = #tpu.pipeline_mode<synchronous>, transform_indices = @transform_6, window_bounds = array<i64: 32, 16>}, {pipeline_mode = #tpu.pipeline_mode<synchronous>, transform_indices = @transform_7, window_bounds = array<i64: 32, 1>}, {pipeline_mode = #tpu.pipeline_mode<synchronous>, transform_indices = @transform_8, window_bounds = array<i64: 16, 32>}, {pipeline_mode = #tpu.pipeline_mode<synchronous>, transform_indices = @transform_9, window_bounds = array<i64: 16, 32>}, {pipeline_mode = #tpu.pipeline_mode<synchronous>, transform_indices = @transform_10, window_bounds = array<i64: 16, 1>}, {pipeline_mode = #tpu.pipeline_mode<synchronous>, transform_indices = @transform_11, window_bounds = array<i64: 16, 1>}, {pipeline_mode = #tpu.pipeline_mode<synchronous>, transform_indices = @transform_12, window_bounds = array<i64: 4, 16>}, {pipeline_mode = #tpu.pipeline_mode<synchronous>, transform_indices = @transform_13, window_bounds = array<i64: 4, 16>}, {pipeline_mode = #tpu.pipeline_mode<synchronous>, transform_indices = @transform_14, window_bounds = array<i64: 16, 16>}, {pipeline_mode = #tpu.pipeline_mode<synchronous>, transform_indices = @transform_15, window_bounds = array<i64: 16, 4>}, {pipeline_mode = #tpu.pipeline_mode<synchronous>, transform_indices = @transform_16, window_bounds = array<i64: 16, 1>}, {pipeline_mode = #tpu.pipeline_mode<synchronous>, transform_indices = @transform_17, window_bounds = array<i64: 4, 16>}, {pipeline_mode = #tpu.pipeline_mode<synchronous>, transform_indices = @transform_18, window_bounds = array<i64: 4, 16>}, {pipeline_mode = #tpu.pipeline_mode<synchronous>, transform_indices = @transform_19, window_bounds = array<i64: 4, 1>}, {pipeline_mode = #tpu.pipeline_mode<synchronous>, transform_indices = @transform_20, window_bounds = array<i64: 4, 1>}, {transform_indices = @transform_21, window_bounds = array<i64: 3, 4, 128>}]} {
    %c0 = arith.constant 0 : index
    %c0_0 = arith.constant 0 : index
    %0 = vector.load %arg1[%c0, %c0_0] : memref<32x128xf32, #tpu.memory_space<vmem>>, vector<32x128xf32>
    %c0_1 = arith.constant 0 : index
    %c0_2 = arith.constant 0 : index
    %c0_3 = arith.constant 0 : index
    %1 = vector.load %arg2[%c0_1, %c0_2, %c0_3] : memref<3x32x128xf32, #tpu.memory_space<vmem>>, vector<1x32x128xf32>
    %2 = vector.shape_cast %1 : vector<1x32x128xf32> to vector<32x128xf32>
    %c1 = arith.constant 1 : index
    %c0_4 = arith.constant 0 : index
    %c0_5 = arith.constant 0 : index
    %3 = vector.load %arg2[%c1, %c0_4, %c0_5] : memref<3x32x128xf32, #tpu.memory_space<vmem>>, vector<1x32x128xf32>
    %4 = vector.shape_cast %3 : vector<1x32x128xf32> to vector<32x128xf32>
    %c2 = arith.constant 2 : index
    %c0_6 = arith.constant 0 : index
    %c0_7 = arith.constant 0 : index
    %5 = vector.load %arg2[%c2, %c0_6, %c0_7] : memref<3x32x128xf32, #tpu.memory_space<vmem>>, vector<1x32x128xf32>
    %6 = vector.shape_cast %5 : vector<1x32x128xf32> to vector<32x128xf32>
    %c0_8 = arith.constant 0 : index
    %c0_9 = arith.constant 0 : index
    %7 = vector.load %arg4[%c0_8, %c0_9] : memref<16x32xf32, #tpu.memory_space<vmem>>, vector<16x32xf32>
    %cst = arith.constant dense<0.000000e+00> : vector<16x128xf32>
    %8 = tpu.matmul %7, %2, %cst {dimension_numbers = #tpu.dot_dimension_numbers<[1], [0], [0], [1], [0, 0, 1, 1], [], []>} : vector<16x32xf32>, vector<32x128xf32>, vector<16x128xf32> -> vector<16x128xf32>
    %c0_10 = arith.constant 0 : index
    %c0_11 = arith.constant 0 : index
    %9 = vector.load %arg4[%c0_10, %c0_11] : memref<16x32xf32, #tpu.memory_space<vmem>>, vector<16x32xf32>
    %cst_12 = arith.constant dense<0.000000e+00> : vector<16x128xf32>
    %10 = tpu.matmul %9, %4, %cst_12 {dimension_numbers = #tpu.dot_dimension_numbers<[1], [0], [0], [1], [0, 0, 1, 1], [], []>} : vector<16x32xf32>, vector<32x128xf32>, vector<16x128xf32> -> vector<16x128xf32>
    %c0_13 = arith.constant 0 : index
    %c0_14 = arith.constant 0 : index
    %11 = vector.load %arg4[%c0_13, %c0_14] : memref<16x32xf32, #tpu.memory_space<vmem>>, vector<16x32xf32>
    %cst_15 = arith.constant dense<0.000000e+00> : vector<16x128xf32>
    %12 = tpu.matmul %11, %6, %cst_15 {dimension_numbers = #tpu.dot_dimension_numbers<[1], [0], [0], [1], [0, 0, 1, 1], [], []>} : vector<16x32xf32>, vector<32x128xf32>, vector<16x128xf32> -> vector<16x128xf32>
    %c0_16 = arith.constant 0 : index
    %c0_17 = arith.constant 0 : index
    %13 = vector.load %arg5[%c0_16, %c0_17] : memref<16x32xf32, #tpu.memory_space<vmem>>, vector<16x32xf32>
    %cst_18 = arith.constant dense<0.000000e+00> : vector<16x128xf32>
    %14 = tpu.matmul %13, %2, %cst_18 {dimension_numbers = #tpu.dot_dimension_numbers<[1], [0], [0], [1], [0, 0, 1, 1], [], []>} : vector<16x32xf32>, vector<32x128xf32>, vector<16x128xf32> -> vector<16x128xf32>
    %c0_19 = arith.constant 0 : index
    %c0_20 = arith.constant 0 : index
    %15 = vector.load %arg5[%c0_19, %c0_20] : memref<16x32xf32, #tpu.memory_space<vmem>>, vector<16x32xf32>
    %cst_21 = arith.constant dense<0.000000e+00> : vector<16x128xf32>
    %16 = tpu.matmul %15, %4, %cst_21 {dimension_numbers = #tpu.dot_dimension_numbers<[1], [0], [0], [1], [0, 0, 1, 1], [], []>} : vector<16x32xf32>, vector<32x128xf32>, vector<16x128xf32> -> vector<16x128xf32>
    %c0_22 = arith.constant 0 : index
    %c0_23 = arith.constant 0 : index
    %17 = vector.load %arg5[%c0_22, %c0_23] : memref<16x32xf32, #tpu.memory_space<vmem>>, vector<16x32xf32>
    %cst_24 = arith.constant dense<0.000000e+00> : vector<16x128xf32>
    %18 = tpu.matmul %17, %6, %cst_24 {dimension_numbers = #tpu.dot_dimension_numbers<[1], [0], [0], [1], [0, 0, 1, 1], [], []>} : vector<16x32xf32>, vector<32x128xf32>, vector<16x128xf32> -> vector<16x128xf32>
    %19 = arith.mulf %8, %8 : vector<16x128xf32>
    %20 = arith.mulf %10, %10 : vector<16x128xf32>
    %21 = arith.addf %19, %20 : vector<16x128xf32>
    %22 = arith.mulf %12, %12 : vector<16x128xf32>
    %23 = arith.addf %21, %22 : vector<16x128xf32>
    %24 = math.sqrt %23 : vector<16x128xf32>
    %c0_25 = arith.constant 0 : index
    %c0_26 = arith.constant 0 : index
    %25 = vector.load %arg6[%c0_25, %c0_26] : memref<32x32xf32, #tpu.memory_space<vmem>>, vector<32x32xf32>
    %cst_27 = arith.constant dense<0.000000e+00> : vector<32x128xf32>
    %26 = tpu.matmul %25, %0, %cst_27 {dimension_numbers = #tpu.dot_dimension_numbers<[1], [0], [0], [1], [0, 0, 1, 1], [], []>} : vector<32x32xf32>, vector<32x128xf32>, vector<32x128xf32> -> vector<32x128xf32>
    %c0_28 = arith.constant 0 : index
    %c0_29 = arith.constant 0 : index
    %27 = vector.load %arg7[%c0_28, %c0_29] : memref<32x16xf32, #tpu.memory_space<vmem>>, vector<32x16xf32>
    %cst_30 = arith.constant dense<0.000000e+00> : vector<32x128xf32>
    %28 = tpu.matmul %27, %24, %cst_30 {dimension_numbers = #tpu.dot_dimension_numbers<[1], [0], [0], [1], [0, 0, 1, 1], [], []>} : vector<32x16xf32>, vector<16x128xf32>, vector<32x128xf32> -> vector<32x128xf32>
    %29 = arith.addf %26, %28 : vector<32x128xf32>
    %c0_31 = arith.constant 0 : index
    %c0_32 = arith.constant 0 : index
    %30 = vector.load %arg8[%c0_31, %c0_32] : memref<32x1xf32, #tpu.memory_space<vmem>>, vector<32x1xf32>
    %31 = vector.broadcast %30 : vector<32x1xf32> to vector<32x128xf32>
    %32 = arith.addf %29, %31 : vector<32x128xf32>
    %cst_33 = arith.constant 0.000000e+00 : f32
    %33 = vector.broadcast %cst_33 : f32 to vector<32x128xf32>
    %34 = arith.subf %33, %32 : vector<32x128xf32>
    %35 = math.exp %34 : vector<32x128xf32>
    %cst_34 = arith.constant 1.000000e+00 : f32
    %36 = vector.broadcast %cst_34 : f32 to vector<32x128xf32>
    %37 = arith.addf %36, %35 : vector<32x128xf32>
    %38 = arith.divf %32, %37 : vector<32x128xf32>
    %c0_35 = arith.constant 0 : index
    %c0_36 = arith.constant 0 : index
    %39 = vector.load %arg9[%c0_35, %c0_36] : memref<16x32xf32, #tpu.memory_space<vmem>>, vector<16x32xf32>
    %cst_37 = arith.constant dense<0.000000e+00> : vector<16x128xf32>
    %40 = tpu.matmul %39, %38, %cst_37 {dimension_numbers = #tpu.dot_dimension_numbers<[1], [0], [0], [1], [0, 0, 1, 1], [], []>} : vector<16x32xf32>, vector<32x128xf32>, vector<16x128xf32> -> vector<16x128xf32>
    %c0_38 = arith.constant 0 : index
    %c0_39 = arith.constant 0 : index
    %41 = vector.load %arg11[%c0_38, %c0_39] : memref<16x1xf32, #tpu.memory_space<vmem>>, vector<16x1xf32>
    %42 = vector.broadcast %41 : vector<16x1xf32> to vector<16x128xf32>
    %43 = arith.addf %40, %42 : vector<16x128xf32>
    %c0_40 = arith.constant 0 : index
    %c0_41 = arith.constant 0 : index
    %44 = vector.load %arg10[%c0_40, %c0_41] : memref<16x32xf32, #tpu.memory_space<vmem>>, vector<16x32xf32>
    %cst_42 = arith.constant dense<0.000000e+00> : vector<16x128xf32>
    %45 = tpu.matmul %44, %38, %cst_42 {dimension_numbers = #tpu.dot_dimension_numbers<[1], [0], [0], [1], [0, 0, 1, 1], [], []>} : vector<16x32xf32>, vector<32x128xf32>, vector<16x128xf32> -> vector<16x128xf32>
    %c0_43 = arith.constant 0 : index
    %c0_44 = arith.constant 0 : index
    %46 = vector.load %arg12[%c0_43, %c0_44] : memref<16x1xf32, #tpu.memory_space<vmem>>, vector<16x1xf32>
    %47 = vector.broadcast %46 : vector<16x1xf32> to vector<16x128xf32>
    %48 = arith.addf %45, %47 : vector<16x128xf32>
    %49 = arith.mulf %48, %14 : vector<16x128xf32>
    %50 = arith.mulf %48, %16 : vector<16x128xf32>
    %51 = arith.mulf %48, %18 : vector<16x128xf32>
    %cst_45 = arith.constant 0.000000e+00 : f32
    %52 = vector.broadcast %cst_45 : f32 to vector<16x128xf32>
    %53 = arith.subf %52, %43 : vector<16x128xf32>
    %54 = math.exp %53 : vector<16x128xf32>
    %cst_46 = arith.constant 1.000000e+00 : f32
    %55 = vector.broadcast %cst_46 : f32 to vector<16x128xf32>
    %56 = arith.addf %55, %54 : vector<16x128xf32>
    %57 = arith.divf %43, %56 : vector<16x128xf32>
    %c0_47 = arith.constant 0 : index
    %c0_48 = arith.constant 0 : index
    %58 = vector.load %arg13[%c0_47, %c0_48] : memref<4x16xf32, #tpu.memory_space<vmem>>, vector<4x16xf32>
    %cst_49 = arith.constant dense<0.000000e+00> : vector<4x128xf32>
    %59 = tpu.matmul %58, %49, %cst_49 {dimension_numbers = #tpu.dot_dimension_numbers<[1], [0], [0], [1], [0, 0, 1, 1], [], []>} : vector<4x16xf32>, vector<16x128xf32>, vector<4x128xf32> -> vector<4x128xf32>
    %c0_50 = arith.constant 0 : index
    %c0_51 = arith.constant 0 : index
    %60 = vector.load %arg13[%c0_50, %c0_51] : memref<4x16xf32, #tpu.memory_space<vmem>>, vector<4x16xf32>
    %cst_52 = arith.constant dense<0.000000e+00> : vector<4x128xf32>
    %61 = tpu.matmul %60, %50, %cst_52 {dimension_numbers = #tpu.dot_dimension_numbers<[1], [0], [0], [1], [0, 0, 1, 1], [], []>} : vector<4x16xf32>, vector<16x128xf32>, vector<4x128xf32> -> vector<4x128xf32>
    %c0_53 = arith.constant 0 : index
    %c0_54 = arith.constant 0 : index
    %62 = vector.load %arg13[%c0_53, %c0_54] : memref<4x16xf32, #tpu.memory_space<vmem>>, vector<4x16xf32>
    %cst_55 = arith.constant dense<0.000000e+00> : vector<4x128xf32>
    %63 = tpu.matmul %62, %51, %cst_55 {dimension_numbers = #tpu.dot_dimension_numbers<[1], [0], [0], [1], [0, 0, 1, 1], [], []>} : vector<4x16xf32>, vector<16x128xf32>, vector<4x128xf32> -> vector<4x128xf32>
    %c0_56 = arith.constant 0 : index
    %c0_57 = arith.constant 0 : index
    %64 = vector.load %arg14[%c0_56, %c0_57] : memref<4x16xf32, #tpu.memory_space<vmem>>, vector<4x16xf32>
    %cst_58 = arith.constant dense<0.000000e+00> : vector<4x128xf32>
    %65 = tpu.matmul %64, %49, %cst_58 {dimension_numbers = #tpu.dot_dimension_numbers<[1], [0], [0], [1], [0, 0, 1, 1], [], []>} : vector<4x16xf32>, vector<16x128xf32>, vector<4x128xf32> -> vector<4x128xf32>
    %c0_59 = arith.constant 0 : index
    %c0_60 = arith.constant 0 : index
    %66 = vector.load %arg14[%c0_59, %c0_60] : memref<4x16xf32, #tpu.memory_space<vmem>>, vector<4x16xf32>
    %cst_61 = arith.constant dense<0.000000e+00> : vector<4x128xf32>
    %67 = tpu.matmul %66, %50, %cst_61 {dimension_numbers = #tpu.dot_dimension_numbers<[1], [0], [0], [1], [0, 0, 1, 1], [], []>} : vector<4x16xf32>, vector<16x128xf32>, vector<4x128xf32> -> vector<4x128xf32>
    %c0_62 = arith.constant 0 : index
    %c0_63 = arith.constant 0 : index
    %68 = vector.load %arg14[%c0_62, %c0_63] : memref<4x16xf32, #tpu.memory_space<vmem>>, vector<4x16xf32>
    %cst_64 = arith.constant dense<0.000000e+00> : vector<4x128xf32>
    %69 = tpu.matmul %68, %51, %cst_64 {dimension_numbers = #tpu.dot_dimension_numbers<[1], [0], [0], [1], [0, 0, 1, 1], [], []>} : vector<4x16xf32>, vector<16x128xf32>, vector<4x128xf32> -> vector<4x128xf32>
    %70 = arith.mulf %59, %59 : vector<4x128xf32>
    %71 = arith.mulf %61, %61 : vector<4x128xf32>
    %72 = arith.addf %70, %71 : vector<4x128xf32>
    %73 = arith.mulf %63, %63 : vector<4x128xf32>
    %74 = arith.addf %72, %73 : vector<4x128xf32>
    %75 = math.sqrt %74 : vector<4x128xf32>
    %c0_65 = arith.constant 0 : index
    %c0_66 = arith.constant 0 : index
    %76 = vector.load %arg15[%c0_65, %c0_66] : memref<16x16xf32, #tpu.memory_space<vmem>>, vector<16x16xf32>
    %cst_67 = arith.constant dense<0.000000e+00> : vector<16x128xf32>
    %77 = tpu.matmul %76, %57, %cst_67 {dimension_numbers = #tpu.dot_dimension_numbers<[1], [0], [0], [1], [0, 0, 1, 1], [], []>} : vector<16x16xf32>, vector<16x128xf32>, vector<16x128xf32> -> vector<16x128xf32>
    %c0_68 = arith.constant 0 : index
    %c0_69 = arith.constant 0 : index
    %78 = vector.load %arg16[%c0_68, %c0_69] : memref<16x4xf32, #tpu.memory_space<vmem>>, vector<16x4xf32>
    %cst_70 = arith.constant dense<0.000000e+00> : vector<16x128xf32>
    %79 = tpu.matmul %78, %75, %cst_70 {dimension_numbers = #tpu.dot_dimension_numbers<[1], [0], [0], [1], [0, 0, 1, 1], [], []>} : vector<16x4xf32>, vector<4x128xf32>, vector<16x128xf32> -> vector<16x128xf32>
    %80 = arith.addf %77, %79 : vector<16x128xf32>
    %c0_71 = arith.constant 0 : index
    %c0_72 = arith.constant 0 : index
    %81 = vector.load %arg17[%c0_71, %c0_72] : memref<16x1xf32, #tpu.memory_space<vmem>>, vector<16x1xf32>
    %82 = vector.broadcast %81 : vector<16x1xf32> to vector<16x128xf32>
    %83 = arith.addf %80, %82 : vector<16x128xf32>
    %cst_73 = arith.constant 0.000000e+00 : f32
    %84 = vector.broadcast %cst_73 : f32 to vector<16x128xf32>
    %85 = arith.subf %84, %83 : vector<16x128xf32>
    %86 = math.exp %85 : vector<16x128xf32>
    %cst_74 = arith.constant 1.000000e+00 : f32
    %87 = vector.broadcast %cst_74 : f32 to vector<16x128xf32>
    %88 = arith.addf %87, %86 : vector<16x128xf32>
    %89 = arith.divf %83, %88 : vector<16x128xf32>
    %c0_75 = arith.constant 0 : index
    %c0_76 = arith.constant 0 : index
    %90 = vector.load %arg18[%c0_75, %c0_76] : memref<4x16xf32, #tpu.memory_space<vmem>>, vector<4x16xf32>
    %cst_77 = arith.constant dense<0.000000e+00> : vector<4x128xf32>
    %91 = tpu.matmul %90, %89, %cst_77 {dimension_numbers = #tpu.dot_dimension_numbers<[1], [0], [0], [1], [0, 0, 1, 1], [], []>} : vector<4x16xf32>, vector<16x128xf32>, vector<4x128xf32> -> vector<4x128xf32>
    %c0_78 = arith.constant 0 : index
    %c0_79 = arith.constant 0 : index
    %92 = vector.load %arg20[%c0_78, %c0_79] : memref<4x1xf32, #tpu.memory_space<vmem>>, vector<4x1xf32>
    %93 = vector.broadcast %92 : vector<4x1xf32> to vector<4x128xf32>
    %94 = arith.addf %91, %93 : vector<4x128xf32>
    %c0_80 = arith.constant 0 : index
    %c0_81 = arith.constant 0 : index
    %95 = vector.load %arg19[%c0_80, %c0_81] : memref<4x16xf32, #tpu.memory_space<vmem>>, vector<4x16xf32>
    %cst_82 = arith.constant dense<0.000000e+00> : vector<4x128xf32>
    %96 = tpu.matmul %95, %89, %cst_82 {dimension_numbers = #tpu.dot_dimension_numbers<[1], [0], [0], [1], [0, 0, 1, 1], [], []>} : vector<4x16xf32>, vector<16x128xf32>, vector<4x128xf32> -> vector<4x128xf32>
    %c0_83 = arith.constant 0 : index
    %c0_84 = arith.constant 0 : index
    %97 = vector.load %arg21[%c0_83, %c0_84] : memref<4x1xf32, #tpu.memory_space<vmem>>, vector<4x1xf32>
    %98 = vector.broadcast %97 : vector<4x1xf32> to vector<4x128xf32>
    %99 = arith.addf %96, %98 : vector<4x128xf32>
    %100 = arith.mulf %99, %65 : vector<4x128xf32>
    %101 = arith.mulf %99, %67 : vector<4x128xf32>
    %102 = arith.mulf %99, %69 : vector<4x128xf32>
    %c0_85 = arith.constant 0 : index
    %c0_86 = arith.constant 0 : index
    %103 = vector.load %arg3[%c0_85, %c0_86] : memref<3x128xf32, #tpu.memory_space<vmem>>, vector<3x128xf32>
    %104 = vector.extract_strided_slice %103 {offsets = [0, 0], sizes = [1, 128], strides = [1, 1]} : vector<3x128xf32> to vector<1x128xf32>
    %105 = vector.broadcast %104 : vector<1x128xf32> to vector<4x128xf32>
    %106 = arith.mulf %105, %94 : vector<4x128xf32>
    %107 = arith.addf %106, %100 : vector<4x128xf32>
    %c0_87 = arith.constant 0 : index
    %c0_88 = arith.constant 0 : index
    %c0_89 = arith.constant 0 : index
    %108 = vector.load %arg22[%c0_87, %c0_88, %c0_89] : memref<3x4x128xf32, #tpu.memory_space<vmem>>, vector<1x4x128xf32>
    %109 = vector.shape_cast %108 : vector<1x4x128xf32> to vector<4x128xf32>
    %110 = vector.shape_cast %107 : vector<4x128xf32> to vector<1x4x128xf32>
    tpu.vector_store %arg22[%c0_87, %c0_88, %c0_89], %110 {strides = array<i32>} : memref<3x4x128xf32, #tpu.memory_space<vmem>>, vector<1x4x128xf32>,
    %111 = vector.extract_strided_slice %103 {offsets = [1, 0], sizes = [1, 128], strides = [1, 1]} : vector<3x128xf32> to vector<1x128xf32>
    %112 = vector.broadcast %111 : vector<1x128xf32> to vector<4x128xf32>
    %113 = arith.mulf %112, %94 : vector<4x128xf32>
    %114 = arith.addf %113, %101 : vector<4x128xf32>
    %c1_90 = arith.constant 1 : index
    %c0_91 = arith.constant 0 : index
    %c0_92 = arith.constant 0 : index
    %115 = vector.load %arg22[%c1_90, %c0_91, %c0_92] : memref<3x4x128xf32, #tpu.memory_space<vmem>>, vector<1x4x128xf32>
    %116 = vector.shape_cast %115 : vector<1x4x128xf32> to vector<4x128xf32>
    %117 = vector.shape_cast %114 : vector<4x128xf32> to vector<1x4x128xf32>
    tpu.vector_store %arg22[%c1_90, %c0_91, %c0_92], %117 {strides = array<i32>} : memref<3x4x128xf32, #tpu.memory_space<vmem>>, vector<1x4x128xf32>,
    %118 = vector.extract_strided_slice %103 {offsets = [2, 0], sizes = [1, 128], strides = [1, 1]} : vector<3x128xf32> to vector<1x128xf32>
    %119 = vector.broadcast %118 : vector<1x128xf32> to vector<4x128xf32>
    %120 = arith.mulf %119, %94 : vector<4x128xf32>
    %121 = arith.addf %120, %102 : vector<4x128xf32>
    %c2_93 = arith.constant 2 : index
    %c0_94 = arith.constant 0 : index
    %c0_95 = arith.constant 0 : index
    %122 = vector.load %arg22[%c2_93, %c0_94, %c0_95] : memref<3x4x128xf32, #tpu.memory_space<vmem>>, vector<1x4x128xf32>
    %123 = vector.shape_cast %122 : vector<1x4x128xf32> to vector<4x128xf32>
    %124 = vector.shape_cast %121 : vector<4x128xf32> to vector<1x4x128xf32>
    tpu.vector_store %arg22[%c2_93, %c0_94, %c0_95], %124 {strides = array<i32>} : memref<3x4x128xf32, #tpu.memory_space<vmem>>, vector<1x4x128xf32>,
    return
  }
  func.func @transform_0(%arg0: i32) -> (i32, i32) {
    %c0_i32 = arith.constant 0 : i32
    %c0_i32_0 = arith.constant 0 : i32
    return %c0_i32, %arg0 : i32, i32
  }
  func.func @transform_1(%arg0: i32) -> (i32, i32, i32) {
    %c0_i32 = arith.constant 0 : i32
    %c0_i32_0 = arith.constant 0 : i32
    %c0_i32_1 = arith.constant 0 : i32
    return %c0_i32, %c0_i32_0, %arg0 : i32, i32, i32
  }
  func.func @transform_2(%arg0: i32) -> (i32, i32) {
    %c0_i32 = arith.constant 0 : i32
    %c0_i32_0 = arith.constant 0 : i32
    return %c0_i32, %arg0 : i32, i32
  }
  func.func @transform_3(%arg0: i32) -> (i32, i32) {
    %c0_i32 = arith.constant 0 : i32
    %c0_i32_0 = arith.constant 0 : i32
    %c0_i32_1 = arith.constant 0 : i32
    return %c0_i32, %c0_i32_0 : i32, i32
  }
  func.func @transform_4(%arg0: i32) -> (i32, i32) {
    %c0_i32 = arith.constant 0 : i32
    %c0_i32_0 = arith.constant 0 : i32
    %c0_i32_1 = arith.constant 0 : i32
    return %c0_i32, %c0_i32_0 : i32, i32
  }
  func.func @transform_5(%arg0: i32) -> (i32, i32) {
    %c0_i32 = arith.constant 0 : i32
    %c0_i32_0 = arith.constant 0 : i32
    %c0_i32_1 = arith.constant 0 : i32
    return %c0_i32, %c0_i32_0 : i32, i32
  }
  func.func @transform_6(%arg0: i32) -> (i32, i32) {
    %c0_i32 = arith.constant 0 : i32
    %c0_i32_0 = arith.constant 0 : i32
    %c0_i32_1 = arith.constant 0 : i32
    return %c0_i32, %c0_i32_0 : i32, i32
  }
  func.func @transform_7(%arg0: i32) -> (i32, i32) {
    %c0_i32 = arith.constant 0 : i32
    %c0_i32_0 = arith.constant 0 : i32
    %c0_i32_1 = arith.constant 0 : i32
    return %c0_i32, %c0_i32_0 : i32, i32
  }
  func.func @transform_8(%arg0: i32) -> (i32, i32) {
    %c0_i32 = arith.constant 0 : i32
    %c0_i32_0 = arith.constant 0 : i32
    %c0_i32_1 = arith.constant 0 : i32
    return %c0_i32, %c0_i32_0 : i32, i32
  }
  func.func @transform_9(%arg0: i32) -> (i32, i32) {
    %c0_i32 = arith.constant 0 : i32
    %c0_i32_0 = arith.constant 0 : i32
    %c0_i32_1 = arith.constant 0 : i32
    return %c0_i32, %c0_i32_0 : i32, i32
  }
  func.func @transform_10(%arg0: i32) -> (i32, i32) {
    %c0_i32 = arith.constant 0 : i32
    %c0_i32_0 = arith.constant 0 : i32
    %c0_i32_1 = arith.constant 0 : i32
    return %c0_i32, %c0_i32_0 : i32, i32
  }
  func.func @transform_11(%arg0: i32) -> (i32, i32) {
    %c0_i32 = arith.constant 0 : i32
    %c0_i32_0 = arith.constant 0 : i32
    %c0_i32_1 = arith.constant 0 : i32
    return %c0_i32, %c0_i32_0 : i32, i32
  }
  func.func @transform_12(%arg0: i32) -> (i32, i32) {
    %c0_i32 = arith.constant 0 : i32
    %c0_i32_0 = arith.constant 0 : i32
    %c0_i32_1 = arith.constant 0 : i32
    return %c0_i32, %c0_i32_0 : i32, i32
  }
  func.func @transform_13(%arg0: i32) -> (i32, i32) {
    %c0_i32 = arith.constant 0 : i32
    %c0_i32_0 = arith.constant 0 : i32
    %c0_i32_1 = arith.constant 0 : i32
    return %c0_i32, %c0_i32_0 : i32, i32
  }
  func.func @transform_14(%arg0: i32) -> (i32, i32) {
    %c0_i32 = arith.constant 0 : i32
    %c0_i32_0 = arith.constant 0 : i32
    %c0_i32_1 = arith.constant 0 : i32
    return %c0_i32, %c0_i32_0 : i32, i32
  }
  func.func @transform_15(%arg0: i32) -> (i32, i32) {
    %c0_i32 = arith.constant 0 : i32
    %c0_i32_0 = arith.constant 0 : i32
    %c0_i32_1 = arith.constant 0 : i32
    return %c0_i32, %c0_i32_0 : i32, i32
  }
  func.func @transform_16(%arg0: i32) -> (i32, i32) {
    %c0_i32 = arith.constant 0 : i32
    %c0_i32_0 = arith.constant 0 : i32
    %c0_i32_1 = arith.constant 0 : i32
    return %c0_i32, %c0_i32_0 : i32, i32
  }
  func.func @transform_17(%arg0: i32) -> (i32, i32) {
    %c0_i32 = arith.constant 0 : i32
    %c0_i32_0 = arith.constant 0 : i32
    %c0_i32_1 = arith.constant 0 : i32
    return %c0_i32, %c0_i32_0 : i32, i32
  }
  func.func @transform_18(%arg0: i32) -> (i32, i32) {
    %c0_i32 = arith.constant 0 : i32
    %c0_i32_0 = arith.constant 0 : i32
    %c0_i32_1 = arith.constant 0 : i32
    return %c0_i32, %c0_i32_0 : i32, i32
  }
  func.func @transform_19(%arg0: i32) -> (i32, i32) {
    %c0_i32 = arith.constant 0 : i32
    %c0_i32_0 = arith.constant 0 : i32
    %c0_i32_1 = arith.constant 0 : i32
    return %c0_i32, %c0_i32_0 : i32, i32
  }
  func.func @transform_20(%arg0: i32) -> (i32, i32) {
    %c0_i32 = arith.constant 0 : i32
    %c0_i32_0 = arith.constant 0 : i32
    %c0_i32_1 = arith.constant 0 : i32
    return %c0_i32, %c0_i32_0 : i32, i32
  }
  func.func @transform_21(%arg0: i32) -> (i32, i32, i32) {
    %c0_i32 = arith.constant 0 : i32
    %c0_i32_0 = arith.constant 0 : i32
    %c0_i32_1 = arith.constant 0 : i32
    return %c0_i32, %c0_i32_0, %arg0 : i32, i32, i32
  }
}

</mosaic_0001>

<bundles_post_ra>
// kernel: tpu_custom_call.1
= control target key start
LH: loop header
LB: loop body
LE: loop exit
PB: predicated region body
PF: predicated region fallthrough
CT: control target
= control target key end

     0   :  { %s2678_s0 = inlined_call_operand.vmem [shape: f32[32,256], index: 0, kind: input, shape index: {}]   ;;  %s2679_s1 = inlined_call_operand.hbm [shape: f32[3,32,256], index: 1, kind: input, shape index: {}]   ;;  %s2680_s2 = inlined_call_operand.hbm [shape: f32[3,256], index: 2, kind: input, shape index: {}]   ;;  %s2681_s3 = inlined_call_operand.vmem [shape: f32[16,32], index: 3, kind: input, shape index: {}]   ;;  %s2682_s4 = inlined_call_operand.vmem [shape: f32[16,32], index: 4, kind: input, shape index: {}]   ;;  %s2683_s5 = inlined_call_operand.vmem [shape: f32[32,32], index: 5, kind: input, shape index: {}]   ;;  %s2684_s6 = inlined_call_operand.vmem [shape: f32[32,16], index: 6, kind: input, shape index: {}]   ;;  %s2685_s7 = inlined_call_operand.vmem [shape: f32[32,1], index: 7, kind: input, shape index: {}]   ;;  %s2686_s8 = inlined_call_operand.vmem [shape: f32[16,32], index: 8, kind: input, shape index: {}]   ;;  %s2687_s9 = inlined_call_operand.vmem [shape: f32[16,32], index: 9, kind: input, shape index: {}]   ;;  %s2688_s10 = inlined_call_operand.vmem [shape: f32[16,1], index: 10, kind: input, shape index: {}]   ;;  %s2689_s11 = inlined_call_operand.vmem [shape: f32[16,1], index: 11, kind: input, shape index: {}]   ;;  %s2690_s12 = inlined_call_operand.vmem [shape: f32[4,16], index: 12, kind: input, shape index: {}]   ;;  %s2691_s13 = inlined_call_operand.vmem [shape: f32[4,16], index: 13, kind: input, shape index: {}]   ;;  %s2692_s14 = inlined_call_operand.hbm [shape: f32[16,16], index: 14, kind: input, shape index: {}]   ;;  %s2693_s15 = inlined_call_operand.vmem [shape: f32[16,4], index: 15, kind: input, shape index: {}]   ;;  %s2694_s16 = inlined_call_operand.vmem [shape: f32[16,1], index: 16, kind: input, shape index: {}]   ;;  %s2695_s17 = inlined_call_operand.vmem [shape: f32[4,16], index: 17, kind: input, shape index: {}]   ;;  %s2696_s18 = inlined_call_operand.vmem [shape: f32[4,16], index: 18, kind: input, shape index: {}]   ;;  %s2697_s19 = inlined_call_operand.vmem [shape: f32[4,1], index: 19, kind: input, shape index: {}]   ;;  %s2698_s20 = inlined_call_operand.vmem [shape: f32[4,1], index: 20, kind: input, shape index: {}]   ;;  %s2699_s21 = inlined_call_operand.hbm [shape: f32[3,4,256], index: 21, kind: output, shape index: {}]  }
   0x1   :  { %2718 = sst [smem:[#allocation20_spill]] %s2678_s0 }
   0x2   :  { %2719 = sst [smem:[#allocation21_spill]] %s2679_s1 }
   0x3   :  { %2720 = sst [smem:[#allocation22_spill]] %s2680_s2 }
   0x4   :  { %2721 = sst [smem:[#allocation23_spill]] %s2681_s3 }
   0x5   :  { %2722 = sst [smem:[#allocation24_spill]] %s2682_s4 }
   0x6   :  { %2723 = sst [smem:[#allocation25_spill]] %s2683_s5 }
   0x7   :  { %2724 = sst [smem:[#allocation26_spill]] %s2684_s6 }
   0x8   :  { %2725 = sst [smem:[#allocation27_spill]] %s2686_s8 }
   0x9   :  { %2726 = sst [smem:[#allocation28_spill]] %s2687_s9 }
   0xa   :  { %2727 = sst [smem:[#allocation29_spill]] %s2689_s11 }
   0xb   :  { %2728 = sst [smem:[#allocation30_spill]] %s2690_s12 }
   0xc   :  { %2729 = sst [smem:[#allocation31_spill]] %s2691_s13 }
   0xd   :  { %2730 = sst [smem:[#allocation32_spill]] %s2692_s14 }
   0xe   :  { %2731 = sst [smem:[#allocation33_spill]] %s2693_s15 }
   0xf   :  { %2732 = sst [smem:[#allocation34_spill]] %s2695_s17 }
  0x10   :  { %2733 = sst [smem:[#allocation35_spill]] %s2696_s18 }
  0x11   :  { %2734 = sst [smem:[#allocation36_spill]] %s2698_s20 }
  0x12   :  { %2735 = sst [smem:[#allocation37_spill]] %s2699_s21 }
  0x13   :  { %26 = vsyncpa [#allocation4], 0 }
  0x14   :  { %28 = vsyncpa [#allocation4 + $0x1], 0 }
  0x15   :  { %29 = vsyncpa [#allocation7], 0 }
  0x16   :  { %31 = vsyncpa [#allocation7 + $0x1], 0 }
  0x17   :  { %32 = vsyncpa [#allocation5], 0 }
  0x18   :  { %34 = vsyncpa [#allocation5 + $0x1], 0  ;;  %s2262_s2 = smov 0   ;;  %s2264_s25 = smov 0  }
  0x19   :  { %s2266_s26 = smov 0   ;;  %s2268_s27 = smov 0  }
  0x1a LB: > { %2736 = sst [smem:[#allocation14_spill]] %s2128_s2  ;;  %s2283_s3 = sadd.s32 4294967295, %s2140_s27   ;;  %s2140_s27 = sphi %s2268_s27, %s2773_s27   ;;  %s2136_s26 = sphi %s2266_s26, %s2775_s26   ;;  %s2132_s25 = sphi %s2264_s25, %s2777_s25   ;;  %s2128_s2 = sphi %s2262_s2, %s2776_s2  }
  0x1b   : > { %2737 = sst [smem:[#allocation15_spill]] %s2136_s26  ;;  %s1810_s28 = sadd.s32 4294967294, %s2140_s27  }
  0x1c   : > { %s2287_s29 = sadd.s32 1, %s2140_s27   ;;  %s47_s0 = sadd.s32 1, %s2136_s26 }
  0x1d   : > { %2738 = sst [smem:[#allocation16_spill]] %s2287_s29  ;;  %s44_s4 = ssub.s32 %s2140_s27, %s2287_s29 }
  0x1e   : > { %p54_p0 = scmp.ne.s32.totalorder %s2136_s26, %s2132_s25  ;;  %p45_p1 = scmp.eq.s32.totalorder %s44_s4, 0 }
  0x1f   : > { %p55_p2 = scmp.eq.s32.totalorder %s2140_s27, 0  ;;  %p86_p3 = scmp.ne.s32.totalorder %s2132_s25, %s2128_s2 }
  0x20   : > { %p87_p4 = scmp.eq.s32.totalorder %s2283_s3, 0  ;;  %p514_p7 = scmp.eq.s32.totalorder %s2283_s3, 1 }
  0x21   : > { %s2299_s30 = scalar_select %p45_p1, %s2136_s26, %s47_s0  }
  0x22   : > { %p2301_p5 = por %p55_p2, %p54_p0  ;;  %p2307_p6 = por %p87_p4, %p86_p3 }
  0x23   : > { %2739 = sst [smem:[#allocation17_spill]] %s2299_s30  ;;  %p520_p8 = scmp.eq.s32.totalorder %s1810_s28, 1 }
  0x24   : > { %p1811_p9 = scmp.ge.s32.totalorder %s2140_s27, 1  ;;  %p527_p10 = scmp.lt.s32.totalorder %s2140_s27, 3 }
  0x25   : > { %p2314_p11 = por %p514_p7, %p54_p0  ;;  %p2318_p12 = por %p520_p8, %p86_p3 }
  0x26   : > { %p2322_p13 = pnand %p1811_p9, %p527_p10  ;;  %s2747_s14 = sld [smem:[#allocation32_spill]] }
  0x27   : > { %s2742_s23 = scalar_select %p2314_p11, 1, 0 }
  0x28   : > { %s2744_s1 = scalar_select %p2318_p12, 1, 0 }
  0x29   : > { %2743 = sst [smem:[#allocation18_spill]] %s2742_s23  ;;  %p1886_p1 = pneg %p2322_p13 }
  0x2a   : > { %2745 = sst [smem:[#allocation19_spill]] %s2744_s1  ;;  %s2142_s28 = smov [#allocation8]  }
  0x2b   : > { %s573_s29 = sshll.u32 %s2142_s28, 4  ;;  %p1887_p0 = pnand %p1886_p1, %p87_p4  ;;  %s574_s29 = int_to_ptr.vmem [resolvable:$true] %s573_s29 }
  0x2c   : > { %s571_s30 = sshll.u32 %s2747_s14, 4  ;;  %s2143_s2 = smov 128   ;;  %s572_s30 = int_to_ptr.hbm [resolvable:$true] %s571_s30 }
  0x2d   : > { %s2144_s23 = smov 8   ;;  %p1813_p2 = scmp.ge.s32.totalorder %s2140_s27, 2 }
  0x2e   : > { %1889 = dma.hbm_to_vmem [thread:$0]  (!%p1887_p0), %s572_s30, 256, %s574_s29, [#allocation7], %s2143_s2, %s2143_s2, %s2144_s23  }
  0x2f   : > { %601 = sbr.rel (%p1813_p2) target bundleno = 109 (0x6d), region = 88 }
  0x34   : > { %604 = sbr.rel (!%p2301_p5) target bundleno = 66 (0x42), region = 92  ;;  %s606_s0 = sand.u32 (%p2301_p5), 1, %s2136_s26  }
  0x35   : > { %s1815_s4 = sshll.u32 (%p2301_p5), %s2140_s27, 3  ;;  %s1814_s14 = sshll.u32 (%p2301_p5), %s606_s0, 5 }
  0x36   : > { %s2748_s21 = sld [smem:[#allocation20_spill]] (%p2301_p5)  ;;  %s608_s2 = scalar_lea.vmem (%p2301_p5), [#allocation2], %s1814_s14 }
  0x3c   : > { %s610_s18 = scalar_lea.vmem %s2748_s21, %s1815_s4 }
  0x3d   : > { %v645_v0 = vld [vmem:[%s610_s18] sm:$0xff]  ;;  %v647_v1 = vld [vmem:[%s610_s18 + $0x10] sm:$0xff] }
  0x3e   : > { %v649_v2 = vld [vmem:[%s610_s18 + $0x20] sm:$0xff]  ;;  %646 = vst [vmem:[%s608_s2] sm:$0xff] %v645_v0  ;;  %v651_v3 = vld [vmem:[%s610_s18 + $0x30] sm:$0xff] }
  0x3f   : > { %648 = vst [vmem:[%s608_s2 + $0x8] sm:$0xff] %v647_v1 }
  0x40   : > { %650 = vst [vmem:[%s608_s2 + $0x10] sm:$0xff] %v649_v2 }
  0x41   : > { %652 = vst [vmem:[%s608_s2 + $0x18] sm:$0xff] %v651_v3 }
  0x42 PF: > { %s2344_s29 = sand.u32 1, %s2136_s26   ;;  %s1816_s30 = sshll.u32 %s2140_s27, 3 }
  0x43   : > { %s1873_s21 = smul.u32 96, %s2344_s29  ;;  %s2749_s0 = sld [smem:[#allocation21_spill]] }
  0x44   : > { %s680_s2 = sand.u32 1, %s2140_s27   ;;  %s660_s17 = scalar_lea.sflag [#allocation4], %s2344_s29 }
  0x45   : > { %s663_s18 = scalar_lea.vmem [#allocation3], %s1873_s21 }
  0x46   : > { %s670_s28 = sshll.u32 %s663_s18, 4  ;;  %s671_s28 = int_to_ptr.vmem [resolvable:$true] %s670_s28 }
  0x49   : > { %s667_s14 = scalar_lea.hbm %s2749_s0, %s1816_s30  ;;  %s2016_s20 = scalar_lea.hbm %s2749_s0, 192 }
  0x4a   : > { %s668_s4 = sshll.u32 %s667_s14, 4  ;;  %s669_s4 = int_to_ptr.hbm [resolvable:$true] %s668_s4 }
  0x4b   : > { %s2010_s15 = sshra.s32 %s669_s4, 4  ;;  %s2011_s15 = int_to_ptr.hbm [resolvable:$true] %s2010_s15 }
  0x4c   : > { %s2012_s13 = scalar_lea.hbm %s2011_s15, 96  ;;  %p2017_p9 = scmp.lt.s32.totalorder %s2011_s15, %s2749_s0 }
  0x4d   : > { %p2013_p3 = scmp.ne.s32.totalorder %s2011_s15, %s2012_s13  ;;  %p2018_p10 = scmp.lt.s32.totalorder %s2016_s20, %s2012_s13 }
  0x4f   : > { %p2014_p7 = pnand %p2013_p3, %p2301_p5  ;;  %p2019_p1 = por %p2018_p10, %p2017_p9 }
  0x51   : > { %p2015_p8 = pneg %p2014_p7 }
  0x53   : > { %p2020_p0 = pnand %p2019_p1, %p2015_p8 }
  0x55   : > { %2023 = shalt.err (!%p2020_p0)
}
  0x56   : > { %s2145_s21 = smov 256   ;;  %s2146_s1 = smov 128  }
  0x57   : > { %s2147_s14 = smov 8   ;;  %s1817_s18 = sshll.u32 %s2344_s29, 2 }
  0x58   : > { %1878 = dma.hbm_to_vmem [thread:$0]  (%p2301_p5), %s669_s4, 1536, %s671_s28, %s660_s17, %s2145_s21, %s2146_s1, %s2147_s14  }
  0x59   : > { %s1818_s12 = sshll.u32 %s2140_s27, 2  ;;  %s2750_s8 = sld [smem:[#allocation22_spill]] }
  0x5a   : > { %s684_s15 = scalar_lea.vmem [#allocation6], %s1817_s18  ;;  %s681_s30 = scalar_lea.sflag [#allocation7], %s680_s2 }
  0x5b   : > { %s692_s13 = sshll.u32 %s684_s15, 4  ;;  %s693_s13 = int_to_ptr.vmem [resolvable:$true] %s692_s13 }
  0x5f   : > { %s688_s23 = scalar_lea.hbm %s2750_s8, %s1818_s12  ;;  %s2044_s4 = scalar_lea.hbm %s2750_s8, 8 }
  0x60   : > { %s690_s20 = sshll.u32 %s688_s23, 4  ;;  %s691_s20 = int_to_ptr.hbm [resolvable:$true] %s690_s20 }
  0x61   : > { %s2038_s0 = sshra.s32 %s691_s20, 4  ;;  %s2039_s0 = int_to_ptr.hbm [resolvable:$true] %s2038_s0 }
  0x62   : > { %s2040_s11 = scalar_lea.hbm %s2039_s0, 4  ;;  %p2045_p9 = scmp.lt.s32.totalorder %s2039_s0, %s2750_s8 }
  0x63   : > { %p2041_p3 = scmp.ne.s32.totalorder %s2039_s0, %s2040_s11  ;;  %p2046_p10 = scmp.lt.s32.totalorder %s2044_s4, %s2040_s11 }
  0x65   : > { %p2042_p7 = pnand %p2041_p3, %p2301_p5  ;;  %p2047_p1 = por %p2046_p10, %p2045_p9 }
  0x67   : > { %p2043_p8 = pneg %p2042_p7 }
  0x69   : > { %p2048_p0 = pnand %p2047_p1, %p2043_p8 }
  0x6b   : > { %2051 = shalt.err (!%p2048_p0)
}
  0x6c   : > { %1879 = dma.hbm_to_vmem [thread:$0]  (%p2301_p5), %s691_s20, 64, %s693_s13, %s681_s30  }
  0x6d PF: > { %701 = sbr.rel (%p2322_p13) target bundleno = 1113 (0x459), region = 138  ;;  %s2381_s2 = sand.u32 (!%p2322_p13), 1, %s2132_s25  }
  0x6e   : > { %s1820_s21 = sshll.u32 (!%p2322_p13), %s2381_s2, 5  ;;  %s1874_s0 = smul.u32 (!%p2322_p13), 96, %s2381_s2 }
  0x6f   : > { %s2385_s11 = scalar_lea.vmem (!%p2322_p13), [#allocation2], %s1820_s21  ;;  %s711_s1 = scalar_lea.sflag (!%p2322_p13), [#allocation4], %s2381_s2 }
  0x70   : > { %s2388_s14 = scalar_lea.vmem (!%p2322_p13), [#allocation3], %s1874_s0 }
  0x72   : > { %2111 = dma.done.wait (%p2307_p6), %s711_s1, 1536  }
  0x73   : > { %2113 = vsyncadd (%p2307_p6), %s711_s1, 4294965760  ;;  %s720_s5 = sand.u32 1, %s2283_s3   ;;  %s1821_s24 = sshll.u32 %s2381_s2, 2 }
  0x74   : > { %s721_s18 = scalar_lea.sflag [#allocation7], %s720_s5  ;;  %s2396_s12 = scalar_lea.vmem [#allocation6], %s1821_s24 }
  0x75   : > { %2115 = dma.done.wait (%p2307_p6), %s721_s18, 64  }
  0x76   : > { %2117 = vsyncadd (%p2307_p6), %s721_s18, 4294967232 }
  0x77   : > { %2119 = dma.done.wait (%p87_p4), [#allocation7], 256  }
  0x78   : > { %2121 = vsyncadd (%p87_p4), [#allocation7], 4294967040  ;;  %v1830_v4 = vld [vmem:[%s2388_s14 + $0x58] sm:$0xff]  ;;  %v1829_v5 = vld [vmem:[%s2388_s14 + $0x50] sm:$0xff]  ;;  %s2751_s23 = sld [smem:[#allocation23_spill]]  ;;  %vm818_vm0 = vcmask 261120  }
  0x79   : > { %v805_v6 = vld [vmem:[%s2388_s14 + $0x18] sm:$0xff]  ;;  %883 = vmatpush.msra.mxu2 %v1830_v4  ;;  %v804_v8 = vld [vmem:[%s2388_s14 + $0x10] sm:$0xff]  ;;  %v1828_v9 = vld [vmem:[%s2388_s14 + $0x48] sm:$0xff]  ;;  %s2752_s17 = sld [smem:[#allocation24_spill]]  ;;  %v2148_v47 = vmov 0   ;;  %vm1013_vm5 = vcmask 130048  }
  0x7a   : > { %837 = vmatpush.msra.mxu0 %v805_v6  ;;  %v1826_v7 = vld [vmem:[%s2388_s14 + $0x38] sm:$0xff]  ;;  %v1825_v10 = vld [vmem:[%s2388_s14 + $0x30] sm:$0xff]  ;;  %914 = vmatpush.msra.mxu3 %v805_v6  ;;  %v803_v11 = vld [vmem:[%s2388_s14 + $0x8] sm:$0xff]  ;;  %s2753_s21 = sld [smem:[#allocation25_spill]]  ;;  %s1875_s5 = smul.u32 12, %s2381_s2 }
  0x7b   : > { %860 = vmatpush.msra.mxu1 %v1826_v7  ;;  %884 = vmatpush.msra.mxu2 %v1829_v5  ;;  %v1824_v12 = vld [vmem:[%s2388_s14 + $0x28] sm:$0xff]  ;;  %v1827_v13 = vld [vmem:[%s2388_s14 + $0x40] sm:$0xff]  ;;  %v801_v19 = vld [vmem:[%s2385_s11 + $0x18] sm:$0xff]  ;;  %s2754_s6 = sld [smem:[#allocation26_spill]]  ;;  %s1870_s18 = sshll.u32 %s2283_s3, 2 }
  0x7c   : > { %838 = vmatpush.msra.mxu0 %v804_v8  ;;  %v802_v14 = vld [vmem:[%s2388_s14] sm:$0xff]  ;;  %915 = vmatpush.msra.mxu3 %v804_v8  ;;  %v800_v20 = vld [vmem:[%s2385_s11 + $0x10] sm:$0xff]  ;;  %v799_v29 = vld [vmem:[%s2385_s11 + $0x8] sm:$0xff]  ;;  %s2755_s28 = sld [smem:[#allocation29_spill]]  ;;  %s797_s29 = scalar_lea.vmem [#allocation9], %s1875_s5 }
  0x7d   : > { %861 = vmatpush.msra.mxu1 %v1825_v10  ;;  %885 = vmatpush.msra.mxu2 %v1828_v9  ;;  %v1823_v16 = vld [vmem:[%s2388_s14 + $0x20] sm:$0xff]  ;;  %v1097_v44 = vld [vmem:[%s2685_s7 + $0x8] sm:$0xff]  ;;  %v1099_v45 = vld [vmem:[%s2685_s7 + $0x18] sm:$0xff]  ;;  %s2760_s24 = sld [smem:[#allocation27_spill]]  ;;  %s1684_s4 = sshll.u32 %s797_s29, 4  ;;  %s1685_s4 = int_to_ptr.vmem [resolvable:$true] %s1684_s4 }
  0x7e   : > { %v816_v15 = vld [vmem:[%s2751_s23] sm:$0xff]  ;;  %839 = vmatpush.msra.mxu0 %v803_v11  ;;  %916 = vmatpush.msra.mxu3 %v803_v11  ;;  %v817_v17 = vld [vmem:[%s2751_s23 + $0x8] sm:$0xff]  ;;  %v1098_v54 = vld [vmem:[%s2685_s7 + $0x10] sm:$0xff]  ;;  %s2761_s26 = sld [smem:[#allocation28_spill]]  ;;  %s1673_s9 = scalar_lea.sflag [#allocation5], %s2381_s2 }
  0x7f   : > { %862 = vmatpush.msra.mxu1 %v1824_v12  ;;  %886 = vmatpush.msra.mxu2 %v1827_v13  ;;  %v894_v18 = vld [vmem:[%s2752_s17] sm:$0xff]  ;;  %v895_v21 = vld [vmem:[%s2752_s17 + $0x8] sm:$0xff]  ;;  %s2763_s30 = sld [smem:[#allocation36_spill]] }
  0x80   : > { %840 = vmatpush.msra.mxu0 %v802_v14  ;;  %1835 = vmatmul.msk.f32.vlgmr.msra.gmra.mxu2 %vm818_vm0, %v816_v15  ;;  %v798_v33 = vld [vmem:[%s2385_s11] sm:$0xff]  ;;  %v1006_v43 = vld [vmem:[%s2753_s21 + $0x8] sm:$0xff]  ;;  %v1007_v52 = vld [vmem:[%s2753_s21 + $0x10] sm:$0xff]  ;;  %s2764_s14 = sld [smem:[#allocation30_spill]] }
  0x81   : > { %863 = vmatpush.msra.mxu1 %v1823_v16  ;;  %1831 = vmatmul.msk.f32.vlgmr.msra.gmra.mxu0 %vm818_vm0, %v816_v15  ;;  %v1005_v36 = vld [vmem:[%s2753_s21] sm:$0xff]  ;;  %v1008_v61 = vld [vmem:[%s2753_s21 + $0x18] sm:$0xff]  ;;  %v1203_v62 = vld [vmem:[%s2688_s10 + $0x8] sm:$0xff]  ;;  %s2765_s22 = sld [smem:[#allocation31_spill]] }
  0x82   : > { %1833 = vmatmul.msk.f32.vlgmr.msra.gmra.mxu1 %vm818_vm0, %v816_v15  ;;  %917 = vmatpush.msra.mxu3 %v802_v14  ;;  %v1096_v53 = vld [vmem:[%s2685_s7] sm:$0xff]  ;;  %v1011_v11 = vld [vmem:[%s2754_s6 + $0x10] sm:$0xff]  ;;  %s2766_s20 = sld [smem:[#allocation33_spill]] }
  0x83   : > { %937 = vmatpush.msrb.mxu0 %v1826_v7  ;;  %960 = vmatpush.msrb.mxu1 %v1830_v4  ;;  %v1202_v63 = vld [vmem:[%s2688_s10] sm:$0xff]  ;;  %s2767_s0 = sld [smem:[#allocation34_spill]] }
  0x84   : > { %1837 = vmatmul.msk.f32.vlgmr.msra.gmra.mxu3 %vm818_vm0, %v894_v18  ;;  %1940 = vset.pattern.permute.xlu1 %v2148_v47  ;;  %v1009_v6 = vld [vmem:[%s2754_s6] sm:$0xff]  ;;  %s2762_s15 = smov %s2761_s26  ;;  %s2769_s13 = sld [smem:[#allocation37_spill]] }
  0x85   : > { %938 = vmatpush.msrb.mxu0 %v1825_v10  ;;  %961 = vmatpush.msrb.mxu1 %v1829_v5  ;;  %v1542_v8 = vld [vmem:[%s2694_s16] sm:$0xff]  ;;  %v1010_v10 = vld [vmem:[%s2754_s6 + $0x8] sm:$0xff] }
  0x86   : > { %1079 = vmatpush.msrb.mxu3 %v801_v19  ;;  %1939 = vset.pattern.permute.xlu0 %v2148_v47 }
  0x87   : > { %939 = vmatpush.msrb.mxu0 %v1824_v12  ;;  %962 = vmatpush.msrb.mxu1 %v1828_v9  ;;  %v1595_v9 = vld [vmem:[%s2697_s19] sm:$0xf]  ;;  %v1012_v12 = vld [vmem:[%s2754_s6 + $0x18] sm:$0xff] }
  0x88   : > { %1836 = vmatmul.msk.f32.gmra.mxu2 %vm818_vm0, %v817_v17  ;;  %1080 = vmatpush.msrb.mxu3 %v800_v20 }
  0x89   : > { %940 = vmatpush.msrb.mxu0 %v1823_v16  ;;  %963 = vmatpush.msrb.mxu1 %v1827_v13 }
  0x8a   : > { %1832 = vmatmul.msk.f32.gmra.mxu0 %vm818_vm0, %v817_v17  ;;  %1834 = vmatmul.msk.f32.gmra.mxu1 %vm818_vm0, %v817_v17  ;;  %s2086_s5 = scalar_lea.hbm %s2769_s13, 24 }
  0x8b   : > { %1081 = vmatpush.msrb.mxu3 %v799_v29  ;;  %1107 = vperm.xlu1 %1940, %v1097_v44  }
  0x8c   : > { %1838 = vmatmul.msk.f32.gmra.mxu3 %vm818_vm0, %v895_v21  ;;  %1117 = vperm.xlu0 %1939, %v1099_v45  }
  0x8d   : > { %1082 = vmatpush.msrb.mxu3 %v798_v33  ;;  %1941 = vset.pattern.permute.xlu2 %v2148_v47 }
  0x92   : > { %1839 = vmatmul.msk.f32.vlgmr.msrb.gmra.mxu0 %vm818_vm0, %v894_v18  ;;  %1841 = vmatmul.msk.f32.vlgmr.msrb.gmra.mxu1 %vm818_vm0, %v894_v18 }
  0x93   : > { %1102 = vperm.xlu1 %1940, %v1096_v53  }
  0x94   : > { %1847 = vmatmul.msk.f32.vlgmr.msrb.gmra.mxu3 %vm818_vm0, %v1005_v36  ;;  %1112 = vperm.xlu0 %1939, %v1098_v54  }
  0x9a   : > { %1840 = vmatmul.msk.f32.gmra.mxu0 %vm818_vm0, %v895_v21  ;;  %1842 = vmatmul.msk.f32.gmra.mxu1 %vm818_vm0, %v895_v21 }
  0x9b   : > { %1206 = vperm.xlu1 %1940, %v1202_v63  }
  0x9c   : > { %1848 = vmatmul.msk.f32.gmra.mxu3 %vm818_vm0, %v1006_v43  ;;  %1211 = vperm.xlu0 %1939, %v1203_v62  }
  0xa3   : > { %1598 = vperm.xlu1 %1940, %v1595_v9  }
  0xa4   : > { %1849 = vmatmul.msk.f32.gmra.mxu3 %vm818_vm0, %v1007_v52  ;;  %1546 = vperm.xlu0 %1939, %v1542_v8  }
  0xac   : > { %1850 = vmatmul.msk.f32.gmra.mxu3 %vm818_vm0, %v1008_v61 }
  0xfd   : > { %v1108_v16 = vpop.permute.xlu1 %1107 }
  0xfe   : > { %v842_v22 = vpop.f32.mrf.mxu0 }
  0xff   : > { %v865_v23 = vpop.f32.mrf.mxu1  ;;  %v971_v24 = vmul.f32 %v842_v22, %v842_v22  ;;  %v1118_v22 = vpop.permute.xlu0 %1117 }
 0x100   : > { %v973_v25 = vmul.f32 %v865_v23, %v865_v23 }
 0x102   : > { %v975_v26 = vadd.f32 %v973_v25, %v971_v24 }
 0x103   : > { %v888_v27 = vpop.f32.mrf.mxu2 }
 0x104   : > { %v977_v28 = vmul.f32 %v888_v27, %v888_v27 }
 0x105   : > { %v1103_v20 = vpop.permute.xlu1 %1102 }
 0x106   : > { %v2445_v30 = vadd.f32 %v977_v28, %v975_v26 }
 0x107   : > { %v845_v31 = vpop.f32.mrf.mxu0  ;;  %v868_v32 = vpop.f32.mrf.mxu1 }
 0x108   : > { %v972_v34 = vmul.f32 %v845_v31, %v845_v31  ;;  %v974_v35 = vmul.f32 %v868_v32, %v868_v32  ;;  %1942 = vrsqrt.f32 %v2445_v30  ;;  %vm988_vm2 = vcmp.eq.f32.partialorder %v2445_v30, inf  ;;  %v2511_v13 = vpop.f32.mrf.mxu3  ;;  %v1113_v33 = vpop.permute.xlu0 %1112 }
 0x109   : > { %v991_v5 = vand.u32 2147483648, %v2445_v30  ;;  %vm990_vm4 = vcmp.eq.f32.partialorder %v2445_v30, 0.0 }
 0x10a   : > { %v976_v37 = vadd.f32 %v974_v35, %v972_v34 }
 0x10b   : > { %v891_v38 = vpop.f32.mrf.mxu2 }
 0x10c   : > { %v978_v39 = vmul.f32 %v891_v38, %v891_v38 }
 0x10e   : > { %v1943_v40 = vpop.eup %1942  ;;  %v980_v41 = vadd.f32 %v978_v39, %v976_v37 }
 0x10f   : > { %v982_v42 = vmul.f32 %v1943_v40, %v2445_v30 }
 0x110   : > { %1944 = vrsqrt.f32 %v980_v41  ;;  %vm1000_vm1 = vcmp.eq.f32.partialorder %v980_v41, inf  ;;  %v1003_v1 = vand.u32 2147483648, %v980_v41  ;;  %vm1002_vm3 = vcmp.eq.f32.partialorder %v980_v41, 0.0  ;;  %v2513_v14 = vpop.f32.mrf.mxu3 }
 0x111   : > { %v983_v46 = vmul.f32 %v1943_v40, %v982_v42 }
 0x113   : > { %v984_v48 = vmul.f32 0.5, %v983_v46 }
 0x115   : > { %v985_v51 = vsub.f32 1.5, %v984_v48 }
 0x116   : > { %v1945_v49 = vpop.eup %1944 }
 0x117   : > { %v994_v50 = vmul.f32 %v1945_v49, %v980_v41  ;;  %v986_v57 = vmul.f32 %v1943_v40, %v985_v51 }
 0x118   : > { %v1084_v15 = vpop.f32.mrf.mxu3 }
 0x119   : > { %v995_v55 = vmul.f32 %v1945_v49, %v994_v50  ;;  %v987_v60 = vmul.f32 %v986_v57, %v2445_v30 }
 0x11b   : > { %v996_v56 = vmul.f32 0.5, %v995_v55  ;;  %v989_v3 = vsel %vm988_vm2, %v2445_v30, %v987_v60 }
 0x11c   : > { %v992_v7 = vsel %vm990_vm4, %v991_v5, %v989_v3 }
 0x11d   : > { %v997_v58 = vsub.f32 1.5, %v996_v56 }
 0x11f   : > { %v998_v59 = vmul.f32 %v1945_v49, %v997_v58  ;;  %v1246_v58 = vld [vmem:[%s2755_s28 + $0x8] sm:$0xff] }
 0x120   : > { %v1087_v19 = vpop.f32.mrf.mxu3  ;;  %1254 = vperm.xlu2 %1941, %v1246_v58  }
 0x121   : > { %v999_v0 = vmul.f32 %v998_v59, %v980_v41 }
 0x123   : > { %v1001_v2 = vsel %vm1000_vm1, %v980_v41, %v999_v0 }
 0x124   : > { %v1004_v4 = vsel %vm1002_vm3, %v1003_v1, %v1001_v2  ;;  %v1245_v2 = vld [vmem:[%s2755_s28] sm:$0xff] }
 0x125   : > { %1040 = vmatpush.msrb.mxu2 %v1004_v4 }
 0x127   : > { %1041 = vmatpush.msrb.mxu2 %v992_v7 }
 0x128   : > { %1843 = vmatmul.msk.f32.vlgmr.msrb.gmra.mxu2 %vm1013_vm5, %v1009_v6  ;;  %v1090_v27 = vpop.f32.mrf.mxu3  ;;  %1249 = vperm.xlu2 %1941, %v1245_v2  }
 0x130   : > { %1844 = vmatmul.msk.f32.gmra.mxu2 %vm1013_vm5, %v1010_v10  ;;  %v1093_v36 = vpop.f32.mrf.mxu3 }
 0x138   : > { %1845 = vmatmul.msk.f32.gmra.mxu2 %vm1013_vm5, %v1011_v11 }
 0x140   : > { %1846 = vmatmul.msk.f32.gmra.mxu2 %vm1013_vm5, %v1012_v12 }
 0x1ab   : > { %v1043_v17 = vpop.f32.mrf.mxu2 }
 0x1ac   : > { %v1085_v18 = vadd.f32 %v1084_v15, %v1043_v17 }
 0x1ae   : > { %v2515_v21 = vadd.f32 %v1103_v20, %v1085_v18 }
 0x1b0   : > { %v1124_v25 = vsub.f32 0.0, %v2515_v21 }
 0x1b2   : > { %v1128_v29 = vmul.f32 1.442695, %v1124_v25 }
 0x1b3   : > { %v1046_v23 = vpop.f32.mrf.mxu2 }
 0x1b4   : > { %v1088_v24 = vadd.f32 %v1087_v19, %v1046_v23  ;;  %1946 = vpow2.f32 %v1128_v29 }
 0x1b6   : > { %v2518_v26 = vadd.f32 %v1108_v16, %v1088_v24 }
 0x1b8   : > { %v1125_v28 = vsub.f32 0.0, %v2518_v26 }
 0x1ba   : > { %v1130_v30 = vmul.f32 1.442695, %v1125_v28  ;;  %v1947_v38 = vpop.eup %1946 }
 0x1bb   : > { %v1049_v31 = vpop.f32.mrf.mxu2  ;;  %v2524_v42 = vadd.f32 1.0, %v1947_v38 }
 0x1bc   : > { %v1091_v32 = vadd.f32 %v1090_v27, %v1049_v31  ;;  %1948 = vpow2.f32 %v1130_v30 }
 0x1bd   : > { %vm1145_vm6 = vweird.f32 %v2524_v42  ;;  %v1149_v20 = vand.u32 2147483647, %v2524_v42 }
 0x1be   : > { %v2521_v34 = vadd.f32 %v1113_v33, %v1091_v32  ;;  %v1543_v33 = vld [vmem:[%s2694_s16 + $0x8] sm:$0xff] }
 0x1bf   : > { %1551 = vperm.xlu2 %1941, %v1543_v33  }
 0x1c0   : > { %v1126_v35 = vsub.f32 0.0, %v2521_v34 }
 0x1c2   : > { %v1132_v37 = vmul.f32 1.442695, %v1126_v35  ;;  %v1949_v40 = vpop.eup %1948 }
 0x1c3   : > { %v1052_v39 = vpop.f32.mrf.mxu2  ;;  %v2528_v44 = vadd.f32 1.0, %v1949_v40 }
 0x1c4   : > { %1950 = vpow2.f32 %v1132_v37  ;;  %v1094_v41 = vadd.f32 %v1093_v36, %v1052_v39 }
 0x1c5   : > { %1952 = vrcp.f32 %v2524_v42  ;;  %vm1160_vm13 = vweird.f32 %v2528_v44  ;;  %v1164_v12 = vand.u32 2147483647, %v2528_v44  ;;  %v1166_v15 = vand.u32 2147483648, %v2528_v44 }
 0x1c6   : > { %v2526_v43 = vadd.f32 %v1118_v22, %v1094_v41  ;;  %1954 = vrcp.f32 %v2528_v44  ;;  %v1151_v22 = vand.u32 2147483648, %v2524_v42  ;;  %v1200_v41 = vld [vmem:[%s2760_s24] sm:$0xff] }
 0x1c7   : > { %v1167_v30 = vor.u32 1.1754944e-38, %v1166_v15 }
 0x1c8   : > { %v1127_v45 = vsub.f32 0.0, %v2526_v43  ;;  %v1152_v35 = vor.u32 1.1754944e-38, %v1151_v22 }
 0x1ca   : > { %v1951_v46 = vpop.eup %1950  ;;  %v1134_v47 = vmul.f32 1.442695, %v1127_v45 }
 0x1cb   : > { %v1138_v48 = vadd.f32 1.0, %v1951_v46  ;;  %v2533_v49 = vpop.eup %1952 }
 0x1cc   : > { %1956 = vpow2.f32 %v1134_v47  ;;  %v2535_v50 = vpop.eup %1954  ;;  %v1141_v56 = vmul.f32 %v2533_v49, %v2524_v42  ;;  %vm1146_vm11 = vweird.f32 %v2533_v49  ;;  %v1243_v42 = vld [vmem:[%s2761_s26] sm:$0xff]  ;;  %v1255_v47 = vpop.permute.xlu2 %1254 }
 0x1cd   : > { %1958 = vrcp.f32 %v1138_v48  ;;  %v1156_v55 = vmul.f32 %v2535_v50, %v2528_v44  ;;  %vm1161_vm8 = vweird.f32 %v2535_v50  ;;  %vm1175_vm9 = vweird.f32 %v1138_v48  ;;  %vm1147_vm4 = vmor %vm1145_vm6, %vm1146_vm11  ;;  %v965_v44 = vpop.f32.mrf.mxu1 }
 0x1ce   : > { %v1142_v60 = vsub.f32 1.0, %v1141_v56  ;;  %v1179_v6 = vand.u32 2147483647, %v1138_v48  ;;  %v1181_v7 = vand.u32 2147483648, %v1138_v48  ;;  %vm2565_vm15 = vmor %vm1160_vm13, %vm1161_vm8  ;;  %vm1150_vm8 = vcmp.eq.f32.partialorder %v1149_v20, 8.507059e+37 }
 0x1cf   : > { %v1157_v59 = vsub.f32 1.0, %v1156_v55 }
 0x1d0   : > { %v1143_v1 = vmul.f32 %v2533_v49, %v1142_v60  ;;  %v1182_v24 = vor.u32 1.1754944e-38, %v1181_v7  ;;  %vm1180_vm3 = vcmp.eq.f32.partialorder %v1179_v6, 8.507059e+37  ;;  %v1330_v7 = vld [vmem:[%s2764_s14] sm:$0xf]  ;;  %s2768_s14 = sld [smem:[#allocation35_spill]] }
 0x1d1   : > { %v1158_v0 = vmul.f32 %v2535_v50, %v1157_v59 }
 0x1d2   : > { %v1957_v51 = vpop.eup %1956  ;;  %v1144_v16 = vadd.f32 %v2533_v49, %v1143_v1 }
 0x1d3   : > { %v1959_v52 = vpop.eup %1958  ;;  %v1139_v53 = vadd.f32 1.0, %v1957_v51  ;;  %v1159_v10 = vadd.f32 %v2535_v50, %v1158_v0 }
 0x1d4   : > { %v1171_v54 = vmul.f32 %v1959_v52, %v1138_v48  ;;  %vm1176_vm7 = vweird.f32 %v1959_v52  ;;  %v1148_v31 = vsel %vm1147_vm4, %v2533_v49, %v1144_v16  ;;  %v1207_v48 = vpop.permute.xlu1 %1206  ;;  %v1250_v55 = vpop.permute.xlu2 %1249 }
 0x1d5   : > { %1960 = vrcp.f32 %v1139_v53  ;;  %v1196_v5 = vand.u32 2147483648, %v1139_v53  ;;  %v1194_v9 = vand.u32 2147483647, %v1139_v53  ;;  %vm2553_vm12 = vmor %vm1175_vm9, %vm1176_vm7  ;;  %vm1190_vm14 = vweird.f32 %v1139_v53  ;;  %v968_v46 = vpop.f32.mrf.mxu1 }
 0x1d6   : > { %v1172_v57 = vsub.f32 1.0, %v1171_v54  ;;  %v1163_v27 = vsel %vm2565_vm15, %v2535_v50, %v1159_v10  ;;  %vm1165_vm7 = vcmp.eq.f32.partialorder %v1164_v12, 8.507059e+37  ;;  %v1153_v38 = vsel %vm1150_vm8, %v1152_v35, %v1148_v31  ;;  %v1212_v54 = vpop.permute.xlu0 %1211  ;;  %v1394_v35 = vld [vmem:[%s2765_s22] sm:$0xf] }
 0x1d7   : > { %v1197_v23 = vor.u32 1.1754944e-38, %v1196_v5  ;;  %vm1195_vm2 = vcmp.eq.f32.partialorder %v1194_v9, 8.507059e+37  ;;  %v1168_v36 = vsel %vm1165_vm7, %v1167_v30, %v1163_v27  ;;  %v1154_v40 = vmul.f32 %v1153_v38, %v2515_v21  ;;  %v1201_v21 = vld [vmem:[%s2760_s24 + $0x8] sm:$0xff] }
 0x1d8   : > { %v1173_v61 = vmul.f32 %v1959_v52, %v1172_v57  ;;  %v1169_v39 = vmul.f32 %v1168_v36, %v2518_v26  ;;  %v1244_v26 = vld [vmem:[%s2762_s15 + $0x8] sm:$0xff] }
 0x1da   : > { %v1174_v4 = vadd.f32 %v1959_v52, %v1173_v61 }
 0x1db   : > { %v1961_v62 = vpop.eup %1960 }
 0x1dc   : > { %v1186_v63 = vmul.f32 %v1961_v62, %v1139_v53  ;;  %vm1191_vm10 = vweird.f32 %v1961_v62  ;;  %v1178_v18 = vsel %vm2553_vm12, %v1959_v52, %v1174_v4 }
 0x1dd   : > { %vm1192_vm1 = vmor %vm1190_vm14, %vm1191_vm10  ;;  %v1183_v29 = vsel %vm1180_vm3, %v1182_v24, %v1178_v18  ;;  %vm1479_vm3 = vcmask 31744  }
 0x1de   : > { %v1187_v3 = vsub.f32 1.0, %v1186_v63  ;;  %v1184_v37 = vmul.f32 %v1183_v29, %v2521_v34  ;;  %v1625_v34 = vld [vmem:[%s2763_s30] sm:$0xf]  ;;  %s1683_s30 = scalar_lea.hbm %s2769_s13, %s1870_s18 }
 0x1df   : > { %1628 = vperm.xlu2 %1941, %v1625_v34   ;;  %s1686_s3 = sshll.u32 %s1683_s30, 4  ;;  %s1687_s3 = int_to_ptr.hbm [resolvable:$true] %s1686_s3 }
 0x1e0   : > { %v1188_v8 = vmul.f32 %v1961_v62, %v1187_v3 }
 0x1e2   : > { %v1189_v17 = vadd.f32 %v1961_v62, %v1188_v8 }
 0x1e4   : > { %v1193_v25 = vsel %vm1192_vm1, %v1961_v62, %v1189_v17  ;;  %vm1486_vm1 = vcmask 1043456  }
 0x1e5   : > { %v1198_v28 = vsel %vm1195_vm2, %v1197_v23, %v1193_v25 }
 0x1e6   : > { %v1199_v32 = vmul.f32 %v1198_v28, %v2526_v43  ;;  %v942_v43 = vpop.f32.mrf.mxu0 }
 0x1e8   : > { %1232 = vmatpush.msra.mxu0 %v1199_v32  ;;  %1275 = vmatpush.msra.mxu1 %v1199_v32 }
 0x1ea   : > { %1233 = vmatpush.msra.mxu0 %v1184_v37  ;;  %1276 = vmatpush.msra.mxu1 %v1184_v37  ;;  %v1475_v37 = vld [vmem:[#allocation8] sm:$0xff] }
 0x1ec   : > { %1234 = vmatpush.msra.mxu0 %v1169_v39  ;;  %1277 = vmatpush.msra.mxu1 %v1169_v39 }
 0x1ee   : > { %1235 = vmatpush.msra.mxu0 %v1154_v40  ;;  %1278 = vmatpush.msra.mxu1 %v1154_v40  ;;  %v945_v45 = vpop.f32.mrf.mxu0 }
 0x1ef   : > { %1851 = vmatmul.msk.f32.vlgmr.msra.gmra.mxu0 %vm818_vm0, %v1200_v41  ;;  %1853 = vmatmul.msk.f32.vlgmr.msra.gmra.mxu1 %vm818_vm0, %v1243_v42 }
 0x1f7   : > { %1852 = vmatmul.msk.f32.gmra.mxu0 %vm818_vm0, %v1201_v21  ;;  %1854 = vmatmul.msk.f32.gmra.mxu1 %vm818_vm0, %v1244_v26  ;;  %v1476_v26 = vld [vmem:[#allocation8 + $0x8] sm:$0xff] }
 0x26c   : > { %v1237_v49 = vpop.f32.mrf.mxu0  ;;  %v1280_v50 = vpop.f32.mrf.mxu1 }
 0x26d   : > { %v2606_v51 = vadd.f32 %v1237_v49, %v1207_v48  ;;  %v1281_v58 = vadd.f32 %v1280_v50, %v1250_v55 }
 0x26f   : > { %v1292_v52 = vsub.f32 0.0, %v2606_v51  ;;  %v1286_v3 = vmul.f32 %v1281_v58, %v2511_v13  ;;  %v1288_v4 = vmul.f32 %v1281_v58, %v942_v43  ;;  %v1290_v6 = vmul.f32 %v1281_v58, %v965_v44 }
 0x271   : > { %v1294_v53 = vmul.f32 1.442695, %v1292_v52  ;;  %v1477_v52 = vld [vmem:[%s2766_s20] sm:$0xff] }
 0x273   : > { %1962 = vpow2.f32 %v1294_v53 }
 0x274   : > { %v1240_v56 = vpop.f32.mrf.mxu0  ;;  %v1283_v57 = vpop.f32.mrf.mxu1 }
 0x275   : > { %v1241_v59 = vadd.f32 %v1240_v56, %v1212_v54  ;;  %v1284_v60 = vadd.f32 %v1283_v57, %v1255_v47  ;;  %v1478_v54 = vld [vmem:[%s2766_s20 + $0x8] sm:$0xff] }
 0x277   : > { %v1293_v61 = vsub.f32 0.0, %v1241_v59  ;;  %v1287_v62 = vmul.f32 %v1284_v60, %v2513_v14  ;;  %v1289_v63 = vmul.f32 %v1284_v60, %v945_v45  ;;  %v1291_v0 = vmul.f32 %v1284_v60, %v968_v46 }
 0x279   : > { %v1963_v1 = vpop.eup %1962  ;;  %v1296_v2 = vmul.f32 1.442695, %v1293_v61  ;;  %1348 = vmatpush.msrb.mxu0 %v1287_v62  ;;  %1368 = vmatpush.msrb.mxu1 %v1289_v63 }
 0x27a   : > { %v1298_v5 = vadd.f32 1.0, %v1963_v1  ;;  %1388 = vmatpush.msra.mxu2 %v1291_v0  ;;  %1412 = vmatpush.msra.mxu3 %v1287_v62 }
 0x27b   : > { %1964 = vpow2.f32 %v1296_v2  ;;  %1349 = vmatpush.msrb.mxu0 %v1286_v3  ;;  %1369 = vmatpush.msrb.mxu1 %v1288_v4  ;;  %v1552_v2 = vpop.permute.xlu2 %1551 }
 0x27c   : > { %1966 = vrcp.f32 %v1298_v5  ;;  %1389 = vmatpush.msra.mxu2 %v1290_v6  ;;  %1413 = vmatpush.msra.mxu3 %v1286_v3  ;;  %vm1305_vm6 = vweird.f32 %v1298_v5  ;;  %v1311_v18 = vand.u32 2147483648, %v1298_v5  ;;  %v1309_v20 = vand.u32 2147483647, %v1298_v5 }
 0x27d   : > { %1857 = vmatmul.msk.f32.vlgmr.msra.gmra.mxu2 %vm1013_vm5, %v1330_v7  ;;  %1432 = vmatpush.msra.mxu0 %v1289_v63 }
 0x27e   : > { %1452 = vmatpush.msra.mxu1 %v1291_v0  ;;  %1855 = vmatmul.msk.f32.vlgmr.msrb.gmra.mxu0 %vm1013_vm5, %v1330_v7  ;;  %v1312_v27 = vor.u32 1.1754944e-38, %v1311_v18  ;;  %vm1310_vm13 = vcmp.eq.f32.partialorder %v1309_v20, 8.507059e+37 }
 0x27f   : > { %1433 = vmatpush.msra.mxu0 %v1288_v4  ;;  %1856 = vmatmul.msk.f32.vlgmr.msrb.gmra.mxu1 %vm1013_vm5, %v1330_v7 }
 0x280   : > { %1453 = vmatpush.msra.mxu1 %v1290_v6  ;;  %1858 = vmatmul.msk.f32.vlgmr.msra.gmra.mxu3 %vm1013_vm5, %v1394_v35 }
 0x281   : > { %v1965_v13 = vpop.eup %1964 }
 0x282   : > { %v1967_v14 = vpop.eup %1966  ;;  %v1299_v8 = vadd.f32 1.0, %v1965_v13 }
 0x283   : > { %v1301_v9 = vmul.f32 %v1967_v14, %v1298_v5  ;;  %vm1306_vm0 = vweird.f32 %v1967_v14 }
 0x284   : > { %1968 = vrcp.f32 %v1299_v8  ;;  %v1326_v19 = vand.u32 2147483648, %v1299_v8  ;;  %v1324_v23 = vand.u32 2147483647, %v1299_v8  ;;  %vm1307_vm10 = vmor %vm1305_vm6, %vm1306_vm0  ;;  %vm1320_vm11 = vweird.f32 %v1299_v8 }
 0x285   : > { %v1302_v10 = vsub.f32 1.0, %v1301_v9 }
 0x286   : > { %v1327_v28 = vor.u32 1.1754944e-38, %v1326_v19  ;;  %vm1325_vm14 = vcmp.eq.f32.partialorder %v1324_v23, 8.507059e+37  ;;  %1859 = vmatmul.msk.f32.vlgmr.msra.gmra.mxu0 %vm1013_vm5, %v1394_v35 }
 0x287   : > { %v1303_v11 = vmul.f32 %v1967_v14, %v1302_v10  ;;  %1860 = vmatmul.msk.f32.vlgmr.msra.gmra.mxu1 %vm1013_vm5, %v1394_v35  ;;  %v1594_v35 = vld [vmem:[%s2767_s0] sm:$0xf]  ;;  %s2080_s0 = sshra.s32 %s1687_s3, 4  ;;  %s2081_s0 = int_to_ptr.hbm [resolvable:$true] %s2080_s0 }
 0x288   : > { %s2082_s11 = scalar_lea.hbm %s2081_s0, 12  ;;  %p2087_p13 = scmp.lt.s32.totalorder %s2081_s0, %s2769_s13 }
 0x289   : > { %v1304_v16 = vadd.f32 %v1967_v14, %v1303_v11  ;;  %p2083_p4 = scmp.ne.s32.totalorder %s2081_s0, %s2082_s11  ;;  %p2088_p3 = scmp.lt.s32.totalorder %s2086_s5, %s2082_s11 }
 0x28a   : > { %v1969_v12 = vpop.eup %1968 }
 0x28b   : > { %v1316_v15 = vmul.f32 %v1969_v12, %v1299_v8  ;;  %vm1321_vm9 = vweird.f32 %v1969_v12  ;;  %v1308_v24 = vsel %vm1307_vm10, %v1967_v14, %v1304_v16  ;;  %p2084_p5 = pnand %p2083_p4, %p2314_p11  ;;  %p2089_p7 = por %p2088_p3, %p2087_p13 }
 0x28c   : > { %vm1322_vm12 = vmor %vm1320_vm11, %vm1321_vm9  ;;  %v1313_v30 = vsel %vm1310_vm13, %v1312_v27, %v1308_v24 }
 0x28d   : > { %v1317_v17 = vsub.f32 1.0, %v1316_v15  ;;  %v1314_v33 = vmul.f32 %v1313_v30, %v2606_v51  ;;  %p2085_p6 = pneg %p2084_p5 }
 0x28f   : > { %v1318_v22 = vmul.f32 %v1969_v12, %v1317_v17  ;;  %p2090_p8 = pnand %p2089_p7, %p2085_p6 }
 0x291   : > { %v1319_v25 = vadd.f32 %v1969_v12, %v1318_v22 }
 0x293   : > { %v1323_v29 = vsel %vm1322_vm12, %v1969_v12, %v1319_v25 }
 0x294   : > { %v1328_v31 = vsel %vm1325_vm14, %v1327_v28, %v1323_v29 }
 0x295   : > { %v1329_v32 = vmul.f32 %v1328_v31, %v1241_v59  ;;  %v1547_v59 = vpop.permute.xlu0 %1546 }
 0x297   : > { %1533 = vmatpush.msrb.mxu3 %v1329_v32 }
 0x299   : > { %1534 = vmatpush.msrb.mxu3 %v1314_v33 }
 0x29a   : > { %1864 = vmatmul.msk.f32.vlgmr.msrb.gmra.mxu3 %vm1013_vm5, %v1475_v37 }
 0x2a2   : > { %1865 = vmatmul.msk.f32.gmra.mxu3 %vm1013_vm5, %v1476_v26 }
 0x2fb   : > { %v1351_v36 = vpop.f32.mrf.mxu0 }
 0x2fc   : > { %v1458_v38 = vmul.f32 %v1351_v36, %v1351_v36  ;;  %v1371_v39 = vpop.f32.mrf.mxu1  ;;  %v1624_v36 = vld [vmem:[%s2768_s14] sm:$0xf] }
 0x2fd   : > { %v1459_v40 = vmul.f32 %v1371_v39, %v1371_v39  ;;  %v1657_v39 = vld [vmem:[%s2396_s12] sm:$0x7] }
 0x2ff   : > { %v1460_v41 = vadd.f32 %v1459_v40, %v1458_v38  ;;  %v1599_v40 = vpop.permute.xlu1 %1598 }
 0x300   : > { %v1391_v42 = vpop.f32.mrf.mxu2 }
 0x301   : > { %v1461_v34 = vmul.f32 %v1391_v42, %v1391_v42  ;;  %v1658_v42 = vperm.slane %v1657_v39, 0 }
 0x303   : > { %v1462_v21 = vadd.f32 %v1461_v34, %v1460_v41  ;;  %v2632_v55 = vpop.f32.mrf.mxu3  ;;  %v1435_v37 = vpop.f32.mrf.mxu0  ;;  %v1662_v34 = vperm.slane %v1657_v39, 1 }
 0x304   : > { %v1455_v38 = vpop.f32.mrf.mxu1  ;;  %v1629_v41 = vpop.permute.xlu2 %1628 }
 0x305   : > { %1970 = vrsqrt.f32 %v1462_v21  ;;  %vm1470_vm15 = vcmp.eq.f32.partialorder %v1462_v21, inf  ;;  %v1473_v50 = vand.u32 2147483648, %v1462_v21  ;;  %vm1472_vm2 = vcmp.eq.f32.partialorder %v1462_v21, 0.0 }
 0x30b   : > { %v1971_v43 = vpop.eup %1970 }
 0x30c   : > { %v1464_v44 = vmul.f32 %v1971_v43, %v1462_v21 }
 0x30e   : > { %v1465_v45 = vmul.f32 %v1971_v43, %v1464_v44 }
 0x310   : > { %v1466_v46 = vmul.f32 0.5, %v1465_v45 }
 0x312   : > { %v1467_v47 = vsub.f32 1.5, %v1466_v46 }
 0x314   : > { %v1468_v48 = vmul.f32 %v1971_v43, %v1467_v47 }
 0x316   : > { %v1469_v49 = vmul.f32 %v1468_v48, %v1462_v21 }
 0x318   : > { %v1471_v51 = vsel %vm1470_vm15, %v1462_v21, %v1469_v49  ;;  %v1667_v21 = vperm.slane %v1657_v39, 2 }
 0x319   : > { %v1474_v53 = vsel %vm1472_vm2, %v1473_v50, %v1471_v51 }
 0x31a   : > { %1861 = vmatpush.msk.msrb.mxu2 %vm1486_vm1, %v1474_v53 }
 0x31b   : > { %1862 = vmatmul.msk.f32.vlgmr.msrb.gmra.mxu2 %vm1479_vm3, %v1477_v52 }
 0x31d   : > { %v1536_v56 = vpop.f32.mrf.mxu3 }
 0x323   : > { %1863 = vmatmul.msk.f32.gmra.mxu2 %vm1479_vm3, %v1478_v54 }
 0x325   : > { %v1539_v62 = vpop.f32.mrf.mxu3 }
 0x39e   : > { %v1507_v57 = vpop.f32.mrf.mxu2 }
 0x39f   : > { %v1537_v58 = vadd.f32 %v1536_v56, %v1507_v57 }
 0x3a1   : > { %v1554_v60 = vadd.f32 %v1547_v59, %v1537_v58 }
 0x3a3   : > { %v1556_v61 = vsub.f32 0.0, %v1554_v60 }
 0x3a5   : > { %v1558_v63 = vmul.f32 1.442695, %v1556_v61 }
 0x3a6   : > { %v1510_v0 = vpop.f32.mrf.mxu2 }
 0x3a7   : > { %1972 = vpow2.f32 %v1558_v63  ;;  %v1540_v1 = vadd.f32 %v1539_v62, %v1510_v0 }
 0x3a9   : > { %v1555_v3 = vadd.f32 %v1552_v2, %v1540_v1 }
 0x3ab   : > { %v1557_v4 = vsub.f32 0.0, %v1555_v3 }
 0x3ad   : > { %v1973_v5 = vpop.eup %1972  ;;  %v1560_v6 = vmul.f32 1.442695, %v1557_v4 }
 0x3ae   : > { %v1562_v7 = vadd.f32 1.0, %v1973_v5 }
 0x3af   : > { %1974 = vpow2.f32 %v1560_v6 }
 0x3b0   : > { %1976 = vrcp.f32 %v1562_v7  ;;  %vm1569_vm7 = vweird.f32 %v1562_v7  ;;  %v1575_v19 = vand.u32 2147483648, %v1562_v7  ;;  %v1573_v23 = vand.u32 2147483647, %v1562_v7 }
 0x3b2   : > { %v1576_v28 = vor.u32 1.1754944e-38, %v1575_v19  ;;  %vm1574_vm11 = vcmp.eq.f32.partialorder %v1573_v23, 8.507059e+37 }
 0x3b5   : > { %v1975_v13 = vpop.eup %1974 }
 0x3b6   : > { %v1977_v14 = vpop.eup %1976  ;;  %v1563_v8 = vadd.f32 1.0, %v1975_v13 }
 0x3b7   : > { %v1565_v9 = vmul.f32 %v1977_v14, %v1562_v7  ;;  %vm1570_vm4 = vweird.f32 %v1977_v14 }
 0x3b8   : > { %1978 = vrcp.f32 %v1563_v8  ;;  %v1590_v18 = vand.u32 2147483648, %v1563_v8  ;;  %v1588_v22 = vand.u32 2147483647, %v1563_v8  ;;  %vm1571_vm0 = vmor %vm1569_vm7, %vm1570_vm4  ;;  %vm1584_vm6 = vweird.f32 %v1563_v8 }
 0x3b9   : > { %v1566_v10 = vsub.f32 1.0, %v1565_v9 }
 0x3ba   : > { %v1591_v27 = vor.u32 1.1754944e-38, %v1590_v18  ;;  %vm1589_vm10 = vcmp.eq.f32.partialorder %v1588_v22, 8.507059e+37 }
 0x3bb   : > { %v1567_v11 = vmul.f32 %v1977_v14, %v1566_v10 }
 0x3bd   : > { %v1568_v17 = vadd.f32 %v1977_v14, %v1567_v11 }
 0x3be   : > { %v1979_v12 = vpop.eup %1978 }
 0x3bf   : > { %v1580_v15 = vmul.f32 %v1979_v12, %v1563_v8  ;;  %vm1585_vm8 = vweird.f32 %v1979_v12  ;;  %v1572_v25 = vsel %vm1571_vm0, %v1977_v14, %v1568_v17 }
 0x3c0   : > { %vm1586_vm9 = vmor %vm1584_vm6, %vm1585_vm8  ;;  %v1577_v31 = vsel %vm1574_vm11, %v1576_v28, %v1572_v25 }
 0x3c1   : > { %v1581_v16 = vsub.f32 1.0, %v1580_v15  ;;  %v1578_v33 = vmul.f32 %v1577_v31, %v1554_v60 }
 0x3c3   : > { %v1582_v20 = vmul.f32 %v1979_v12, %v1581_v16 }
 0x3c5   : > { %v1583_v24 = vadd.f32 %v1979_v12, %v1582_v20 }
 0x3c7   : > { %v1587_v29 = vsel %vm1586_vm9, %v1979_v12, %v1583_v24 }
 0x3c8   : > { %v1592_v30 = vsel %vm1589_vm10, %v1591_v27, %v1587_v29 }
 0x3c9   : > { %v1593_v32 = vmul.f32 %v1592_v30, %v1555_v3 }
 0x3cb   : > { %1618 = vmatpush.msrb.mxu0 %v1593_v32  ;;  %1648 = vmatpush.msrb.mxu1 %v1593_v32 }
 0x3cd   : > { %1619 = vmatpush.msrb.mxu0 %v1578_v33  ;;  %1649 = vmatpush.msrb.mxu1 %v1578_v33 }
 0x3ce   : > { %1866 = vmatmul.msk.f32.vlgmr.msrb.gmra.mxu0 %vm1013_vm5, %v1594_v35  ;;  %1867 = vmatmul.msk.f32.vlgmr.msrb.gmra.mxu1 %vm1013_vm5, %v1624_v36 }
 0x44b   : > { %v1621_v26 = vpop.f32.mrf.mxu0  ;;  %v1651_v43 = vpop.f32.mrf.mxu1 }
 0x44c   : > { %v1622_v44 = vadd.f32 %v1621_v26, %v1599_v40  ;;  %v1652_v45 = vadd.f32 %v1651_v43, %v1629_v41 }
 0x44e   : > { %v1659_v46 = vmul.f32 %v1658_v42, %v1622_v44  ;;  %v1663_v47 = vmul.f32 %v1662_v34, %v1622_v44  ;;  %v1668_v48 = vmul.f32 %v1667_v21, %v1622_v44  ;;  %v1654_v49 = vmul.f32 %v1652_v45, %v2632_v55 }
 0x44f   : > { %v1655_v50 = vmul.f32 %v1652_v45, %v1435_v37  ;;  %v1656_v51 = vmul.f32 %v1652_v45, %v1455_v38 }
 0x450   : > { %v1660_v52 = vadd.f32 %v1659_v46, %v1654_v49 }
 0x451   : > { %v1664_v53 = vadd.f32 %v1663_v47, %v1655_v50  ;;  %v1669_v54 = vadd.f32 %v1668_v48, %v1656_v51 }
 0x452   : > { %1661 = vst [vmem:[%s797_s29] sm:$0xf] %v1660_v52 }
 0x453   : > { %1868 = vst [vmem:[%s797_s29 + $0x4] sm:$0xf] %v1664_v53 }
 0x454   : > { %1869 = vst [vmem:[%s797_s29 + $0x8] sm:$0xf] %v1669_v54 }
 0x455   : > { %2093 = shalt.err (!%p2090_p8)
}
 0x456   : > { %s2149_s2 = smov 64   ;;  %s2150_s26 = smov 128  }
 0x457   : > { %s2151_s30 = smov 4  }
 0x458   : > { %1884 = dma.vmem_to_hbm [thread:$0]  (%p2314_p11), %s1685_s4, 192, %s1687_s3, %s1673_s9, %s2149_s2, %s2150_s26, %s2151_s30  }
 0x459 PF: > { %s2771_s29 = sld [smem:[#allocation14_spill]]  ;;  %p1891_p9 = pnand %p1813_p2, %p2318_p12 }
 0x45b   : > { %p1892_p10 = pneg %p1891_p9 }
 0x45f   : > { %s1701_s1 = sand.u32 1, %s2771_s29  }
 0x460   : > { %s1702_s0 = scalar_lea.sflag [#allocation5], %s1701_s1 }
 0x461   : > { %2123 = dma.done.wait (%p1892_p10), %s1702_s0, 192  }
 0x462   : > { %2125 = vsyncadd (%p1892_p10), %s1702_s0, 4294967104  ;;  %s2773_s27 = sld [smem:[#allocation16_spill]]  ;;  %s2776_s2 = smov %s2132_s25 }
 0x463   : > { %s2774_s11 = sld [smem:[#allocation15_spill]] }
 0x464   : > { %s2775_s26 = sld [smem:[#allocation17_spill]] }
 0x468   : > { %p37_p1 = scmp.ge.s32.totalorder %s2773_s27, 4  }
 0x469   : > { %s2777_s25 = smov %s2774_s11 }
 0x46a   :  { %39 = sbr.rel (!%p37_p1) target bundleno = 26 (0x1a), region = 216 }
 0x46f   :  { %1708 = vsyncpa [#allocation4], 1 }
 0x470   :  { %1710 = vsyncpa [#allocation4 + $0x1], 1 }
 0x471   :  { %1711 = vsyncpa [#allocation7], 1 }
 0x472   :  { %1713 = vsyncpa [#allocation7 + $0x1], 1 }
 0x473   :  { %1714 = vsyncpa [#allocation5], 1 }
 0x474   :  { %1716 = vsyncpa [#allocation5 + $0x1], 1 }

</bundles_post_ra>
